<compile_context>
chip_gen: v7x
topology: tpu7x:2x2x1
jax: 0.10.0
libtpu: 0.0.40
codegen_flags: <defaults>
</compile_context>

<pallas_src>
import functools

import jax
import jax.numpy as jnp
from jax import lax
from jax.experimental import pallas as pl
from jax.experimental.pallas import tpu as pltpu

OUT_CH = 128
C_PAD = 128                            # input channels padded to a full lane width
CONVS = ((2, 1), (4, 2), (6, 3))       # (kernel_size, padding) per branch
MAXPAD = max(p for _, p in CONVS)      # 3
N_SHIFTS = max(MAXPAD - p + k for k, p in CONVS)   # 6 distinct time shifts needed
N_TAPS = sum(k for k, _ in CONVS)      # 12
N_OUT = OUT_CH * len(CONVS)            # 384


def _fused_conv_kernel(x_ref, w1_ref, w2_ref, w3_ref, b_ref, o_ref, *,
                       tb, lv, lout):
    # x_ref : (tb, l_pad, C_PAD)   time-padded input block (compute dtype)
    # wK_ref: (k*C_PAD, OUT_CH)    branch K's taps stacked along the MXU K dim
    # b_ref : (1, N_OUT)           biases (f32)
    # o_ref : (tb, N_OUT)          fused output block (f32)
    xv = x_ref[...]                                        # (tb, l_pad, C_PAD)

    # im2col: X6[b, s, d*C_PAD + c] == xv[b, s + d, c] for d in [0, N_SHIFTS).
    # The 6 shifted views share one lane concat; each branch's LHS is then a
    # lane-aligned slice of X6 and the per-tap summation happens in the MXU.
    # TODO(synk): the d>0 slices start at a non-multiple-of-8 sublane; replace
    # them with pltpu.roll (XLU) once packed-bf16 sublane rotates are verified.
    shifted = [xv[:, d:d + lv, :] for d in range(N_SHIFTS)]
    x6 = jnp.concatenate(shifted, axis=2)                  # (tb, lv, 6*C_PAD)
    x6 = x6.reshape(tb * lv, N_SHIFTS * C_PAD)             # lv % 8 == 0: trivial

    # Validity mask: only time positions s < lout exist in the PyTorch output.
    t_idx = lax.broadcasted_iota(jnp.int32, (lv, OUT_CH), 0)
    valid = (t_idx < lout)[None]                           # (1, lv, OUT_CH)

    w_refs = (w1_ref, w2_ref, w3_ref)
    for ci, (k, pad) in enumerate(CONVS):
        off = MAXPAD - pad                   # first shift used by this branch
        lhs = x6[:, off * C_PAD:(off + k) * C_PAD]         # lane-aligned view
        z = jnp.dot(lhs, w_refs[ci][...],
                    preferred_element_type=jnp.float32)    # (tb*lv, 128) f32
        z = z.reshape(tb, lv, OUT_CH)
        z = jnp.where(valid, z, -jnp.inf)
        m = jnp.max(z, axis=1)                             # temporal max (tb,128)
        # Bias (constant over time) + ReLU commute with the temporal max.
        o_ref[:, ci * OUT_CH:(ci + 1) * OUT_CH] = jnp.maximum(
            m + b_ref[:, ci * OUT_CH:(ci + 1) * OUT_CH], 0.0)


def conv_feature_extractor(x, weights, biases, *, batch_tile=None,
                           compute_dtype=jnp.bfloat16):
    """x: (B, L, C_in) f32 (the PyTorch input BEFORE its .transpose(1,2)).
    weights[i]: (OUT_CH, C_in, k_i) PyTorch Conv1d layout; biases[i]: (OUT_CH,).
    Returns (B, 3*OUT_CH) f32.  compute_dtype=jnp.float32 is the exact path;
    the bf16 default rounds only the matmul inputs (accumulation stays f32)."""
    B, L, C = x.shape
    lout = L + 1                              # L + 2p - k + 1 for every branch
    lv = pl.cdiv(lout, 8) * 8                 # sublane-aligned temporal window
    l_pad = lv + 8                            # room for time shifts 0..5 (< 8)

    # Batch tile: multiple of 8 (full (8,128) output tiles -> unmasked stores),
    # grown only while the folded M = tb*l_pad stays modest and >= 4 grid steps
    # remain so the double-buffered pipeline reaches steady state per core.
    if batch_tile is None:
        bt8 = pl.cdiv(B, 8)
        t4 = max(1, bt8 // 4)                 # keep >= 4 grid steps if B allows
        tmxu = max(1, 512 // (8 * l_pad))     # keep the folded M around <= 512
        batch_tile = 8 * min(bt8, t4, tmxu)
    tb = batch_tile
    b_pad = pl.cdiv(B, tb) * tb

    # Zero padding: batch -> multiple of tb, time -> MAXPAD leading + trailing
    # to l_pad, channels -> 128.  Zeros are inert in the dot; padded batch rows
    # are sliced off at the end.
    # TODO(synk): fuse this pad/cast into the pallas_call input (in-kernel
    # zeroed-VMEM copy or allow_input_fusion) to drop the extra HBM round trip.
    xp = jnp.pad(x, ((0, b_pad - B),
                     (MAXPAD, l_pad - L - MAXPAD),
                     (0, C_PAD - C))).astype(compute_dtype)

    # Per-branch weights stacked along K in tap order: row t*C_PAD + c <-> tap t,
    # channel c, matching the lane order of the in-kernel im2col.
    w_stacked = []
    for (k, _), w in zip(CONVS, weights):
        wt = jnp.transpose(w, (2, 1, 0))                     # (k, C_in, OUT_CH)
        wt = jnp.pad(wt, ((0, 0), (0, C_PAD - C), (0, 0)))   # (k, C_PAD, OUT_CH)
        w_stacked.append(wt.reshape(k * C_PAD, OUT_CH).astype(compute_dtype))
    b_all = jnp.concatenate(biases, axis=0).reshape(1, N_OUT).astype(jnp.float32)

    # Explicit VMEM budget: double-buffered x block + weights + im2col/z slack.
    isz = jnp.dtype(compute_dtype).itemsize
    x_blk = tb * l_pad * C_PAD * isz
    w_tot = N_TAPS * C_PAD * OUT_CH * isz
    x6_blk = tb * lv * N_SHIFTS * C_PAD * isz
    z_blk = tb * lv * OUT_CH * 4
    vmem_need = 2 * x_blk + 2 * w_tot + x6_blk + 2 * z_blk + (2 << 20)
    vmem_limit = int(min(max(vmem_need, 32 << 20), 128 << 20))

    kernel = functools.partial(_fused_conv_kernel, tb=tb, lv=lv, lout=lout)
    # TODO(synk): for very long L, add an "arbitrary" time-chunk grid axis with a
    # running max carried in VMEM scratch (pl.when init/finalize) so the x / x6
    # blocks stay bounded on v7x's 64 MiB VMEM.
    out = pl.pallas_call(
        kernel,
        out_shape=jax.ShapeDtypeStruct((b_pad, N_OUT), jnp.float32),
        grid_spec=pltpu.PrefetchScalarGridSpec(
            num_scalar_prefetch=0,
            grid=(b_pad // tb,),
            in_specs=[
                pl.BlockSpec((tb, l_pad, C_PAD), lambda i: (i, 0, 0)),
                pl.BlockSpec((CONVS[0][0] * C_PAD, OUT_CH), lambda i: (0, 0)),
                pl.BlockSpec((CONVS[1][0] * C_PAD, OUT_CH), lambda i: (0, 0)),
                pl.BlockSpec((CONVS[2][0] * C_PAD, OUT_CH), lambda i: (0, 0)),
                pl.BlockSpec((1, N_OUT), lambda i: (0, 0)),
            ],
            out_specs=pl.BlockSpec((tb, N_OUT), lambda i: (i, 0)),
        ),
        compiler_params=pltpu.CompilerParams(
            dimension_semantics=("parallel",),
            vmem_limit_bytes=vmem_limit),
    )(xp, *w_stacked, b_all)
    return out[:B]


def init_params(input_dim, key):
    """Deterministic init mimicking nn.Conv1d defaults (uniform +-1/sqrt(fan_in))."""
    weights, biases = [], []
    keys = jax.random.split(key, 2 * len(CONVS))
    for i, (k, _) in enumerate(CONVS):
        bound = 1.0 / (input_dim * k) ** 0.5
        w = jax.random.uniform(keys[2 * i], (OUT_CH, input_dim, k),
                               jnp.float32, -bound, bound)
        b = jax.random.uniform(keys[2 * i + 1], (OUT_CH,),
                               jnp.float32, -bound, bound)
        weights.append(w)
        biases.append(b)
    return weights, biases


def _reference(x, weights, biases):
    """Pure-JAX mirror of the PyTorch forward (for verification only)."""
    B, L, _ = x.shape
    outs = []
    for (k, p), w, b in zip(CONVS, weights, biases):
        xp = jnp.pad(x, ((0, 0), (p, p), (0, 0)))
        lout = L + 2 * p - k + 1
        y = jnp.zeros((B, lout, OUT_CH), jnp.float32)
        for t in range(k):
            y = y + jnp.einsum('blc,oc->blo', xp[:, t:t + lout, :], w[:, :, t])
        y = jnp.maximum(y + b[None, None, :], 0.0)
        outs.append(jnp.max(y, axis=1))
    return jnp.concatenate(outs, axis=1)


if __name__ == "__main__":
    input_dim = 100   # matches the module's script constant
    B, L = 2, 8       # small batch / sequence length

    key = jax.random.PRNGKey(0)
    k_x, k_p = jax.random.split(key)
    x = jax.random.normal(k_x, (B, L, input_dim), jnp.float32)
    weights, biases = init_params(input_dim, k_p)

    y_ref = _reference(x, weights, biases)

    # Exact path (f32 matmul inputs): tight tolerance against the reference.
    y32 = jax.block_until_ready(
        conv_feature_extractor(x, weights, biases, compute_dtype=jnp.float32))
    assert y32.shape == (B, N_OUT), y32.shape
    assert y32.dtype == jnp.float32
    assert jnp.allclose(y32, y_ref, atol=1e-4, rtol=1e-4), \
        float(jnp.max(jnp.abs(y32 - y_ref)))

    # Default fast path (bf16 matmul inputs, f32 accumulation): loose tolerance.
    y16 = jax.block_until_ready(conv_feature_extractor(x, weights, biases))
    assert y16.shape == (B, N_OUT), y16.shape
    assert y16.dtype == jnp.float32
    assert jnp.allclose(y16, y_ref, atol=5e-2, rtol=5e-2), \
        float(jnp.max(jnp.abs(y16 - y_ref)))

    print("KERNEL_OK")
</pallas_src>

<mosaic_0001>
module attributes {stable_mosaic.version = 11 : i64} {
  func.func @_fused_conv_kernel(%arg0: i32, %arg1: memref<8x24x128xf32, #tpu.memory_space<vmem>>, %arg2: memref<256x128xf32, #tpu.memory_space<vmem>>, %arg3: memref<512x128xf32, #tpu.memory_space<vmem>>, %arg4: memref<768x128xf32, #tpu.memory_space<vmem>>, %arg5: memref<1x384xf32, #tpu.memory_space<vmem>>, %arg6: memref<8x384xf32, #tpu.memory_space<vmem>>) attributes {dimension_semantics = [#tpu.dimension_semantics<parallel>], iteration_bounds = array<i64: 1>, scalar_prefetch = 0 : i64, scratch_operands = 0 : i64, tpu.core_type = #tpu.core_type<tc>, window_params = [{transform_indices = @transform_0, window_bounds = array<i64: 8, 24, 128>}, {pipeline_mode = #tpu.pipeline_mode<synchronous>, transform_indices = @transform_1, window_bounds = array<i64: 256, 128>}, {pipeline_mode = #tpu.pipeline_mode<synchronous>, transform_indices = @transform_2, window_bounds = array<i64: 512, 128>}, {pipeline_mode = #tpu.pipeline_mode<synchronous>, transform_indices = @transform_3, window_bounds = array<i64: 768, 128>}, {pipeline_mode = #tpu.pipeline_mode<synchronous>, transform_indices = @transform_4, window_bounds = array<i64: 1, 384>}, {transform_indices = @transform_5, window_bounds = array<i64: 8, 384>}]} {
    %c0 = arith.constant 0 : index
    %c0_0 = arith.constant 0 : index
    %c0_1 = arith.constant 0 : index
    %0 = vector.load %arg1[%c0, %c0_0, %c0_1] : memref<8x24x128xf32, #tpu.memory_space<vmem>>, vector<8x24x128xf32>
    %1 = vector.extract_strided_slice %0 {offsets = [0, 0, 0], sizes = [8, 16, 128], strides = [1, 1, 1]} : vector<8x24x128xf32> to vector<8x16x128xf32>
    %2 = vector.extract_strided_slice %0 {offsets = [0, 1, 0], sizes = [8, 16, 128], strides = [1, 1, 1]} : vector<8x24x128xf32> to vector<8x16x128xf32>
    %3 = vector.extract_strided_slice %0 {offsets = [0, 2, 0], sizes = [8, 16, 128], strides = [1, 1, 1]} : vector<8x24x128xf32> to vector<8x16x128xf32>
    %4 = vector.extract_strided_slice %0 {offsets = [0, 3, 0], sizes = [8, 16, 128], strides = [1, 1, 1]} : vector<8x24x128xf32> to vector<8x16x128xf32>
    %5 = vector.extract_strided_slice %0 {offsets = [0, 4, 0], sizes = [8, 16, 128], strides = [1, 1, 1]} : vector<8x24x128xf32> to vector<8x16x128xf32>
    %6 = vector.extract_strided_slice %0 {offsets = [0, 5, 0], sizes = [8, 16, 128], strides = [1, 1, 1]} : vector<8x24x128xf32> to vector<8x16x128xf32>
    %7 = tpu.concatenate %1, %2, %3, %4, %5, %6 in 2 : vector<8x16x128xf32>, vector<8x16x128xf32>, vector<8x16x128xf32>, vector<8x16x128xf32>, vector<8x16x128xf32>, vector<8x16x128xf32> -> vector<8x16x768xf32>
    %8 = vector.shape_cast %7 : vector<8x16x768xf32> to vector<128x768xf32>
    %9 = tpu.iota {dimensions = array<i32: 0>} : vector<16x128xi32>
    %c9_i32 = arith.constant 9 : i32
    %10 = vector.broadcast %c9_i32 : i32 to vector<16x128xi32>
    %11 = arith.cmpi slt, %9, %10 : vector<16x128xi32>
    %12 = vector.shape_cast %11 : vector<16x128xi1> to vector<1x16x128xi1>
    %13 = vector.extract_strided_slice %8 {offsets = [0, 256], sizes = [128, 256], strides = [1, 1]} : vector<128x768xf32> to vector<128x256xf32>
    %c0_2 = arith.constant 0 : index
    %c0_3 = arith.constant 0 : index
    %14 = vector.load %arg2[%c0_2, %c0_3] : memref<256x128xf32, #tpu.memory_space<vmem>>, vector<256x128xf32>
    %cst = arith.constant dense<0.000000e+00> : vector<128x128xf32>
    %15 = tpu.matmul %13, %14, %cst {dimension_numbers = #tpu.dot_dimension_numbers<[1], [0], [0], [1], [0, 0, 1, 1], [], []>} : vector<128x256xf32>, vector<256x128xf32>, vector<128x128xf32> -> vector<128x128xf32>
    %16 = vector.shape_cast %15 : vector<128x128xf32> to vector<8x16x128xf32>
    %cst_4 = arith.constant 0xFF800000 : f32
    %17 = vector.shape_cast %12 : vector<1x16x128xi1> to vector<1x16x128xi1>
    %18 = vector.broadcast %17 : vector<1x16x128xi1> to vector<8x16x128xi1>
    %19 = vector.broadcast %cst_4 : f32 to vector<8x16x128xf32>
    %20 = arith.select %18, %16, %19 : vector<8x16x128xi1>, vector<8x16x128xf32>
    %cst_5 = arith.constant dense<0xFF800000> : vector<8x128xf32>
    %21 = vector.multi_reduction <maximumf>, %20, %cst_5 [1] : vector<8x16x128xf32> to vector<8x128xf32>
    %c0_6 = arith.constant 0 : index
    %c0_7 = arith.constant 0 : index
    %22 = vector.load %arg5[%c0_6, %c0_7] : memref<1x384xf32, #tpu.memory_space<vmem>>, vector<1x128xf32>
    %23 = vector.broadcast %22 : vector<1x128xf32> to vector<8x128xf32>
    %24 = arith.addf %21, %23 : vector<8x128xf32>
    %cst_8 = arith.constant 0.000000e+00 : f32
    %25 = vector.broadcast %cst_8 : f32 to vector<8x128xf32>
    %26 = arith.maximumf %24, %25 : vector<8x128xf32>
    %c0_9 = arith.constant 0 : index
    %c0_10 = arith.constant 0 : index
    %27 = vector.load %arg6[%c0_9, %c0_10] : memref<8x384xf32, #tpu.memory_space<vmem>>, vector<8x128xf32>
    tpu.vector_store %arg6[%c0_9, %c0_10], %26 {strides = array<i32>} : memref<8x384xf32, #tpu.memory_space<vmem>>, vector<8x128xf32>,
    %28 = vector.extract_strided_slice %8 {offsets = [0, 128], sizes = [128, 512], strides = [1, 1]} : vector<128x768xf32> to vector<128x512xf32>
    %c0_11 = arith.constant 0 : index
    %c0_12 = arith.constant 0 : index
    %29 = vector.load %arg3[%c0_11, %c0_12] : memref<512x128xf32, #tpu.memory_space<vmem>>, vector<512x128xf32>
    %cst_13 = arith.constant dense<0.000000e+00> : vector<128x128xf32>
    %30 = tpu.matmul %28, %29, %cst_13 {dimension_numbers = #tpu.dot_dimension_numbers<[1], [0], [0], [1], [0, 0, 1, 1], [], []>} : vector<128x512xf32>, vector<512x128xf32>, vector<128x128xf32> -> vector<128x128xf32>
    %31 = vector.shape_cast %30 : vector<128x128xf32> to vector<8x16x128xf32>
    %cst_14 = arith.constant 0xFF800000 : f32
    %32 = vector.shape_cast %12 : vector<1x16x128xi1> to vector<1x16x128xi1>
    %33 = vector.broadcast %32 : vector<1x16x128xi1> to vector<8x16x128xi1>
    %34 = vector.broadcast %cst_14 : f32 to vector<8x16x128xf32>
    %35 = arith.select %33, %31, %34 : vector<8x16x128xi1>, vector<8x16x128xf32>
    %cst_15 = arith.constant dense<0xFF800000> : vector<8x128xf32>
    %36 = vector.multi_reduction <maximumf>, %35, %cst_15 [1] : vector<8x16x128xf32> to vector<8x128xf32>
    %c0_16 = arith.constant 0 : index
    %c128 = arith.constant 128 : index
    %37 = vector.load %arg5[%c0_16, %c128] : memref<1x384xf32, #tpu.memory_space<vmem>>, vector<1x128xf32>
    %38 = vector.broadcast %37 : vector<1x128xf32> to vector<8x128xf32>
    %39 = arith.addf %36, %38 : vector<8x128xf32>
    %cst_17 = arith.constant 0.000000e+00 : f32
    %40 = vector.broadcast %cst_17 : f32 to vector<8x128xf32>
    %41 = arith.maximumf %39, %40 : vector<8x128xf32>
    %c0_18 = arith.constant 0 : index
    %c128_19 = arith.constant 128 : index
    %42 = vector.load %arg6[%c0_18, %c128_19] : memref<8x384xf32, #tpu.memory_space<vmem>>, vector<8x128xf32>
    tpu.vector_store %arg6[%c0_18, %c128_19], %41 {strides = array<i32>} : memref<8x384xf32, #tpu.memory_space<vmem>>, vector<8x128xf32>,
    %c0_20 = arith.constant 0 : index
    %c0_21 = arith.constant 0 : index
    %43 = vector.load %arg4[%c0_20, %c0_21] : memref<768x128xf32, #tpu.memory_space<vmem>>, vector<768x128xf32>
    %cst_22 = arith.constant dense<0.000000e+00> : vector<128x128xf32>
    %44 = tpu.matmul %8, %43, %cst_22 {dimension_numbers = #tpu.dot_dimension_numbers<[1], [0], [0], [1], [0, 0, 1, 1], [], []>} : vector<128x768xf32>, vector<768x128xf32>, vector<128x128xf32> -> vector<128x128xf32>
    %45 = vector.shape_cast %44 : vector<128x128xf32> to vector<8x16x128xf32>
    %cst_23 = arith.constant 0xFF800000 : f32
    %46 = vector.shape_cast %12 : vector<1x16x128xi1> to vector<1x16x128xi1>
    %47 = vector.broadcast %46 : vector<1x16x128xi1> to vector<8x16x128xi1>
    %48 = vector.broadcast %cst_23 : f32 to vector<8x16x128xf32>
    %49 = arith.select %47, %45, %48 : vector<8x16x128xi1>, vector<8x16x128xf32>
    %cst_24 = arith.constant dense<0xFF800000> : vector<8x128xf32>
    %50 = vector.multi_reduction <maximumf>, %49, %cst_24 [1] : vector<8x16x128xf32> to vector<8x128xf32>
    %c0_25 = arith.constant 0 : index
    %c256 = arith.constant 256 : index
    %51 = vector.load %arg5[%c0_25, %c256] : memref<1x384xf32, #tpu.memory_space<vmem>>, vector<1x128xf32>
    %52 = vector.broadcast %51 : vector<1x128xf32> to vector<8x128xf32>
    %53 = arith.addf %50, %52 : vector<8x128xf32>
    %cst_26 = arith.constant 0.000000e+00 : f32
    %54 = vector.broadcast %cst_26 : f32 to vector<8x128xf32>
    %55 = arith.maximumf %53, %54 : vector<8x128xf32>
    %c0_27 = arith.constant 0 : index
    %c256_28 = arith.constant 256 : index
    %56 = vector.load %arg6[%c0_27, %c256_28] : memref<8x384xf32, #tpu.memory_space<vmem>>, vector<8x128xf32>
    tpu.vector_store %arg6[%c0_27, %c256_28], %55 {strides = array<i32>} : memref<8x384xf32, #tpu.memory_space<vmem>>, vector<8x128xf32>,
    return
  }
  func.func @transform_0(%arg0: i32) -> (i32, i32, i32) {
    %c0_i32 = arith.constant 0 : i32
    %c0_i32_0 = arith.constant 0 : i32
    %c0_i32_1 = arith.constant 0 : i32
    return %arg0, %c0_i32, %c0_i32_0 : i32, i32, i32
  }
  func.func @transform_1(%arg0: i32) -> (i32, i32) {
    %c0_i32 = arith.constant 0 : i32
    %c0_i32_0 = arith.constant 0 : i32
    %c0_i32_1 = arith.constant 0 : i32
    return %c0_i32, %c0_i32_0 : i32, i32
  }
  func.func @transform_2(%arg0: i32) -> (i32, i32) {
    %c0_i32 = arith.constant 0 : i32
    %c0_i32_0 = arith.constant 0 : i32
    %c0_i32_1 = arith.constant 0 : i32
    return %c0_i32, %c0_i32_0 : i32, i32
  }
  func.func @transform_3(%arg0: i32) -> (i32, i32) {
    %c0_i32 = arith.constant 0 : i32
    %c0_i32_0 = arith.constant 0 : i32
    %c0_i32_1 = arith.constant 0 : i32
    return %c0_i32, %c0_i32_0 : i32, i32
  }
  func.func @transform_4(%arg0: i32) -> (i32, i32) {
    %c0_i32 = arith.constant 0 : i32
    %c0_i32_0 = arith.constant 0 : i32
    %c0_i32_1 = arith.constant 0 : i32
    return %c0_i32, %c0_i32_0 : i32, i32
  }
  func.func @transform_5(%arg0: i32) -> (i32, i32) {
    %c0_i32 = arith.constant 0 : i32
    %c0_i32_0 = arith.constant 0 : i32
    return %arg0, %c0_i32 : i32, i32
  }
}

</mosaic_0001>

<bundles_post_ra>
// kernel: tpu_custom_call.1
= control target key start
LH: loop header
LB: loop body
LE: loop exit
PB: predicated region body
PF: predicated region fallthrough
CT: control target
= control target key end

     0   :  { %10 = vsyncpa [#allocation3], 0  ;;  %s3551_s0 = inlined_call_operand.hbm [shape: f32[8,24,128], index: 0, kind: input, shape index: {}]   ;;  %s3552_s1 = inlined_call_operand.hbm [shape: f32[256,128], index: 1, kind: input, shape index: {}]   ;;  %s3553_s2 = inlined_call_operand.hbm [shape: f32[512,128], index: 2, kind: input, shape index: {}]   ;;  %s3554_s3 = inlined_call_operand.hbm [shape: f32[768,128], index: 3, kind: input, shape index: {}]   ;;  %s3555_s4 = inlined_call_operand.vmem [shape: f32[1,384], index: 4, kind: input, shape index: {}]   ;;  %s3556_s5 = inlined_call_operand.hbm [shape: f32[8,384], index: 5, kind: output, shape index: {}]  }
   0x1   :  { %11 = vsyncpa [#allocation6], 0 }
   0x2   :  { %12 = vsyncpa [#allocation9], 0 }
   0x3   :  { %13 = vsyncpa [#allocation4], 0  ;;  %s2669_s18 = smov [#allocation5]   ;;  %s2670_s20 = smov [#allocation2]  }
   0x4   :  { %s31_s19 = sshll.u32 %s2669_s18, 4  ;;  %s19_s21 = sshll.u32 %s2670_s20, 4  ;;  %s32_s19 = int_to_ptr.vmem [resolvable:$true] %s31_s19  ;;  %s2706_s21 = int_to_ptr.vmem [resolvable:$true] %s19_s21 }
   0x5   :  { %s2551_s24 = scalar_lea.hbm %s3552_s1, 4096 }
   0x6   :  { %p2552_p0 = scmp.ne.s32.totalorder %s3552_s1, %s2551_s24  ;;  %p2555_p1 = scmp.lt.u32.totalorder %s2551_s24, %s3552_s1 }
   0x8   :  { %p2557_p2 = pnand %p2555_p1, %p2552_p0 }
   0xa   :  { %2560 = shalt.err (!%p2557_p2)
}
   0xb   :  { %s2561_s29 = scalar_lea.vmem %s32_s19, 4096  ;;  %p2566_p4 = scmp.lt.s32.totalorder %s32_s19, %s32_s19 }
   0xc   :  { %p2562_p3 = scmp.ne.s32.totalorder %s32_s19, %s2561_s29  ;;  %p2567_p5 = scmp.lt.s32.totalorder %s2561_s29, %s2561_s29 }
   0xe   :  { %p2568_p6 = por %p2567_p5, %p2566_p4 }
  0x10   :  { %p2569_p7 = pnand %p2568_p6, %p2562_p3 }
  0x12   :  { %2572 = shalt.err (!%p2569_p7)
}
  0x13   :  { %s2671_s30 = smov 128   ;;  %s2672_s6 = smov 8  }
  0x14   :  { %37 = dma.hbm_to_vmem [thread:$0]  %s3552_s1, 4096, %s32_s19, [#allocation6], %s2671_s30, %s2671_s30, %s2672_s6  }
  0x15   :  { %s2573_s11 = scalar_lea.hbm %s3551_s0, 3072 }
  0x16   :  { %p2574_p8 = scmp.ne.s32.totalorder %s3551_s0, %s2573_s11  ;;  %p2577_p9 = scmp.lt.u32.totalorder %s2573_s11, %s3551_s0 }
  0x18   :  { %p2579_p10 = pnand %p2577_p9, %p2574_p8 }
  0x1a   :  { %2582 = shalt.err (!%p2579_p10)
}
  0x1b   :  { %s2583_s16 = scalar_lea.vmem %s2706_s21, 3072  ;;  %p2588_p12 = scmp.lt.s32.totalorder %s2706_s21, %s2706_s21 }
  0x1c   :  { %p2584_p11 = scmp.ne.s32.totalorder %s2706_s21, %s2583_s16  ;;  %p2589_p13 = scmp.lt.s32.totalorder %s2583_s16, %s2583_s16 }
  0x1e   :  { %p2590_p0 = por %p2589_p13, %p2588_p12 }
  0x20   :  { %p2591_p1 = pnand %p2590_p0, %p2584_p11 }
  0x22   :  { %2594 = shalt.err (!%p2591_p1)
}
  0x23   :  { %25 = dma.hbm_to_vmem [thread:$0]  %s3551_s0, 3072, %s2706_s21, [#allocation3], %s2671_s30, %s2671_s30, %s2672_s6  }
  0x24   :  { %s2673_s18 = smov [#allocation7]   ;;  %s2674_s20 = smov [#allocation8]  }
  0x25   :  { %s43_s19 = sshll.u32 %s2673_s18, 4  ;;  %s55_s22 = sshll.u32 %s2674_s20, 4  ;;  %s44_s19 = int_to_ptr.vmem [resolvable:$true] %s43_s19  ;;  %s2743_s22 = int_to_ptr.vmem [resolvable:$true] %s55_s22 }
  0x26   :  { %s2595_s25 = scalar_lea.hbm %s3553_s2, 8192 }
  0x27   :  { %p2596_p2 = scmp.ne.s32.totalorder %s3553_s2, %s2595_s25  ;;  %p2599_p3 = scmp.lt.u32.totalorder %s2595_s25, %s3553_s2 }
  0x29   :  { %p2601_p4 = pnand %p2599_p3, %p2596_p2 }
  0x2b   :  { %2604 = shalt.err (!%p2601_p4)
}
  0x2c   :  { %s2605_s0 = scalar_lea.vmem %s44_s19, 8192  ;;  %p2610_p6 = scmp.lt.s32.totalorder %s44_s19, %s44_s19 }
  0x2d   :  { %p2606_p5 = scmp.ne.s32.totalorder %s44_s19, %s2605_s0  ;;  %p2611_p7 = scmp.lt.s32.totalorder %s2605_s0, %s2605_s0 }
  0x2f   :  { %p2612_p8 = por %p2611_p7, %p2610_p6 }
  0x31   :  { %p2613_p9 = pnand %p2612_p8, %p2606_p5 }
  0x33   :  { %2616 = shalt.err (!%p2613_p9)
}
  0x34   :  { %49 = dma.hbm_to_vmem [thread:$0]  %s3553_s2, 8192, %s44_s19, [#allocation6], %s2671_s30, %s2671_s30, %s2672_s6  }
  0x35   :  { %s2617_s10 = scalar_lea.hbm %s3554_s3, 12288 }
  0x36   :  { %p2618_p10 = scmp.ne.s32.totalorder %s3554_s3, %s2617_s10  ;;  %p2621_p11 = scmp.lt.u32.totalorder %s2617_s10, %s3554_s3 }
  0x38   :  { %p2623_p12 = pnand %p2621_p11, %p2618_p10 }
  0x3a   :  { %2626 = shalt.err (!%p2623_p12)
}
  0x3b   :  { %s2627_s15 = scalar_lea.vmem %s2743_s22, 12288  ;;  %p2632_p0 = scmp.lt.s32.totalorder %s2743_s22, %s2743_s22 }
  0x3c   :  { %p2628_p13 = scmp.ne.s32.totalorder %s2743_s22, %s2627_s15  ;;  %p2633_p1 = scmp.lt.s32.totalorder %s2627_s15, %s2627_s15 }
  0x3e   :  { %p2634_p2 = por %p2633_p1, %p2632_p0 }
  0x40   :  { %p2635_p3 = pnand %p2634_p2, %p2628_p13 }
  0x42   :  { %2638 = shalt.err (!%p2635_p3)
}
  0x43   :  { %61 = dma.hbm_to_vmem [thread:$0]  %s3554_s3, 12288, %s2743_s22, [#allocation9], %s2671_s30, %s2671_s30, %s2672_s6  }
  0x44   :  { %2661 = dma.done.wait [#allocation3], 3072  }
  0x45   :  { %2662 = vsyncadd [#allocation3], 4294964224 }
  0x46   :  { %2663 = dma.done.wait [#allocation6], 12288  }
  0x47   :  { %2664 = vsyncadd [#allocation6], 4294955008 }
  0x48   :  { %2665 = dma.done.wait [#allocation9], 12288  }
  0x49   :  { %2666 = vsyncadd [#allocation9], 4294955008  ;;  %v430_v0 = vld [vmem:[#allocation5 + $0x80] sm:$0xff]  ;;  %v431_v1 = vld [vmem:[#allocation5 + $0x88] sm:$0xff]  ;;  %vm238_vm0 = vcmask 1044480   ;;  %vm181_vm1 = vcmask 1045504  }
  0x4a   :  { %v414_v2 = vld [vmem:[#allocation5] sm:$0xff]  ;;  %v2344_v3 = vpack.c.bf16 %v431_v1, %v430_v0  ;;  %v415_v4 = vld [vmem:[#allocation5 + $0x8] sm:$0xff]  ;;  %v432_v11 = vld [vmem:[#allocation5 + $0x90] sm:$0xff]  ;;  %vm124_vm2 = vcmask 1046528   ;;  %vm295_vm3 = vcmask 1043456   ;;  %vm352_vm4 = vcmask 1042432  }
  0x4b   :  { %v737_v5 = vld [vmem:[#allocation7 + $0x80] sm:$0xff]  ;;  %v738_v6 = vld [vmem:[#allocation7 + $0x88] sm:$0xff]  ;;  %v2346_v7 = vpack.c.bf16 %v415_v4, %v414_v2  ;;  %v433_v13 = vld [vmem:[#allocation5 + $0x98] sm:$0xff]  ;;  %vm699_vm6 = vcmask 1041409   ;;  %vm702_vm7 = vcmask 1042434   ;;  %vm705_vm8 = vcmask 1043459  }
  0x4c   :  { %v2376_v8 = vpack.c.bf16 %v738_v6, %v737_v5  ;;  %v721_v9 = vld [vmem:[#allocation7] sm:$0xff]  ;;  %v722_v10 = vld [vmem:[#allocation7 + $0x8] sm:$0xff]  ;;  %2345 = vmatprep.subr.bf16.mxu0 %v2344_v3  ;;  %v416_v14 = vld [vmem:[#allocation5 + $0x10] sm:$0xff]  ;;  %v2348_v16 = vpack.c.bf16 %v433_v13, %v432_v11  ;;  %vm708_vm9 = vcmask 1044484   ;;  %vm711_vm10 = vcmask 1045509  }
  0x4d   :  { %v2378_v12 = vpack.c.bf16 %v722_v10, %v721_v9  ;;  %v417_v15 = vld [vmem:[#allocation5 + $0x18] sm:$0xff]  ;;  %2347 = vmatpush3.bf16.msra.mxu0 %v2346_v7  ;;  %v739_v18 = vld [vmem:[#allocation7 + $0x90] sm:$0xff]  ;;  %v434_v23 = vld [vmem:[#allocation5 + $0xa0] sm:$0xff]  ;;  %vm714_vm11 = vcmask 1046534   ;;  %vm717_vm12 = vcmask 1047559  }
  0x4e   :  { %2377 = vmatprep.subr.bf16.mxu1 %v2376_v8  ;;  %v2350_v17 = vpack.c.bf16 %v417_v15, %v416_v14  ;;  %v740_v19 = vld [vmem:[#allocation7 + $0x98] sm:$0xff]  ;;  %v723_v20 = vld [vmem:[#allocation7 + $0x10] sm:$0xff]  ;;  %v435_v24 = vld [vmem:[#allocation5 + $0xa8] sm:$0xff]  ;;  %2349 = vmatprep.subr.bf16.mxu0 %v2348_v16 }
  0x4f   :  { %2379 = vmatpush3.bf16.msra.mxu1 %v2378_v12  ;;  %v2380_v21 = vpack.c.bf16 %v740_v19, %v739_v18  ;;  %v724_v22 = vld [vmem:[#allocation7 + $0x18] sm:$0xff]  ;;  %v2352_v26 = vpack.c.bf16 %v435_v24, %v434_v23  ;;  %v418_v27 = vld [vmem:[#allocation5 + $0x20] sm:$0xff]  ;;  %v419_v28 = vld [vmem:[#allocation5 + $0x28] sm:$0xff] }
  0x50   :  { %v2382_v25 = vpack.c.bf16 %v724_v22, %v723_v20  ;;  %v741_v29 = vld [vmem:[#allocation7 + $0xa0] sm:$0xff]  ;;  %v742_v30 = vld [vmem:[#allocation7 + $0xa8] sm:$0xff]  ;;  %v2354_v33 = vpack.c.bf16 %v419_v28, %v418_v27  ;;  %v436_v35 = vld [vmem:[#allocation5 + $0xb0] sm:$0xff] }
  0x51   :  { %2381 = vmatprep.subr.bf16.mxu1 %v2380_v21  ;;  %v725_v31 = vld [vmem:[#allocation7 + $0x20] sm:$0xff]  ;;  %v726_v32 = vld [vmem:[#allocation7 + $0x28] sm:$0xff]  ;;  %2351 = vmatpush3.bf16.msra.mxu0 %v2350_v17  ;;  %v2384_v34 = vpack.c.bf16 %v742_v30, %v741_v29  ;;  %v437_v36 = vld [vmem:[#allocation5 + $0xb8] sm:$0xff] }
  0x52   :  { %v420_v37 = vld [vmem:[#allocation5 + $0x30] sm:$0xff]  ;;  %2353 = vmatprep.subr.bf16.mxu0 %v2352_v26  ;;  %v2386_v38 = vpack.c.bf16 %v726_v32, %v725_v31  ;;  %v2356_v39 = vpack.c.bf16 %v437_v36, %v436_v35  ;;  %v421_v40 = vld [vmem:[#allocation5 + $0x38] sm:$0xff]  ;;  %v438_v46 = vld [vmem:[#allocation5 + $0xc0] sm:$0xff] }
  0x53   :  { %2383 = vmatpush3.bf16.msra.mxu1 %v2382_v25  ;;  %v743_v41 = vld [vmem:[#allocation7 + $0xb0] sm:$0xff]  ;;  %v744_v42 = vld [vmem:[#allocation7 + $0xb8] sm:$0xff]  ;;  %v439_v47 = vld [vmem:[#allocation5 + $0xc8] sm:$0xff]  ;;  %v2358_v48 = vpack.c.bf16 %v421_v40, %v420_v37 }
  0x54   :  { %2385 = vmatprep.subr.bf16.mxu1 %v2384_v34  ;;  %v2388_v43 = vpack.c.bf16 %v744_v42, %v743_v41  ;;  %v727_v44 = vld [vmem:[#allocation7 + $0x30] sm:$0xff]  ;;  %v728_v45 = vld [vmem:[#allocation7 + $0x38] sm:$0xff]  ;;  %v745_v49 = vld [vmem:[#allocation7 + $0xc0] sm:$0xff]  ;;  %v2360_v52 = vpack.c.bf16 %v439_v47, %v438_v46 }
  0x55   :  { %2355 = vmatpush3.bf16.msra.mxu0 %v2354_v33  ;;  %v746_v50 = vld [vmem:[#allocation7 + $0xc8] sm:$0xff]  ;;  %v2390_v51 = vpack.c.bf16 %v728_v45, %v727_v44  ;;  %v422_v53 = vld [vmem:[#allocation5 + $0x40] sm:$0xff]  ;;  %v440_v58 = vld [vmem:[#allocation5 + $0xd0] sm:$0xff] }
  0x56   :  { %2357 = vmatprep.subr.bf16.mxu0 %v2356_v39  ;;  %v423_v54 = vld [vmem:[#allocation5 + $0x48] sm:$0xff]  ;;  %v729_v55 = vld [vmem:[#allocation7 + $0x40] sm:$0xff]  ;;  %v2392_v56 = vpack.c.bf16 %v746_v50, %v745_v49  ;;  %v441_v59 = vld [vmem:[#allocation5 + $0xd8] sm:$0xff] }
  0x57   :  { %2387 = vmatpush3.bf16.msra.mxu1 %v2386_v38  ;;  %v730_v57 = vld [vmem:[#allocation7 + $0x48] sm:$0xff]  ;;  %v747_v60 = vld [vmem:[#allocation7 + $0xd0] sm:$0xff]  ;;  %v748_v61 = vld [vmem:[#allocation7 + $0xd8] sm:$0xff]  ;;  %v2362_v62 = vpack.c.bf16 %v423_v54, %v422_v53  ;;  %v2364_v0 = vpack.c.bf16 %v441_v59, %v440_v58 }
  0x58   :  { %2389 = vmatprep.subr.bf16.mxu1 %v2388_v43  ;;  %v2394_v63 = vpack.c.bf16 %v730_v57, %v729_v55  ;;  %v424_v1 = vld [vmem:[#allocation5 + $0x50] sm:$0xff]  ;;  %v425_v2 = vld [vmem:[#allocation5 + $0x58] sm:$0xff]  ;;  %v2396_v4 = vpack.c.bf16 %v748_v61, %v747_v60  ;;  %v442_v6 = vld [vmem:[#allocation5 + $0xe0] sm:$0xff] }
  0x59   :  { %2359 = vmatpush3.bf16.msra.mxu0 %v2358_v48  ;;  %v731_v3 = vld [vmem:[#allocation7 + $0x50] sm:$0xff]  ;;  %v732_v5 = vld [vmem:[#allocation7 + $0x58] sm:$0xff]  ;;  %v443_v7 = vld [vmem:[#allocation5 + $0xe8] sm:$0xff]  ;;  %v2366_v10 = vpack.c.bf16 %v425_v2, %v424_v1 }
  0x5a   :  { %2361 = vmatprep.subr.bf16.mxu0 %v2360_v52  ;;  %v749_v8 = vld [vmem:[#allocation7 + $0xe0] sm:$0xff]  ;;  %v750_v9 = vld [vmem:[#allocation7 + $0xe8] sm:$0xff]  ;;  %v2398_v13 = vpack.c.bf16 %v732_v5, %v731_v3  ;;  %v2368_v14 = vpack.c.bf16 %v443_v7, %v442_v6  ;;  %v444_v22 = vld [vmem:[#allocation5 + $0xf0] sm:$0xff] }
  0x5b   :  { %2391 = vmatpush3.bf16.msra.mxu1 %v2390_v51  ;;  %v426_v11 = vld [vmem:[#allocation5 + $0x60] sm:$0xff]  ;;  %v427_v15 = vld [vmem:[#allocation5 + $0x68] sm:$0xff]  ;;  %v2400_v20 = vpack.c.bf16 %v750_v9, %v749_v8  ;;  %v445_v23 = vld [vmem:[#allocation5 + $0xf8] sm:$0xff] }
  0x5c   :  { %2393 = vmatprep.subr.bf16.mxu1 %v2392_v56  ;;  %v2780_v12 = vld [vmem:[#allocation2] sm:$0xff]  ;;  %v2782_v17 = vld [vmem:[#allocation2 + $0x8] sm:$0xff]  ;;  %v751_v26 = vld [vmem:[#allocation7 + $0xf0] sm:$0xff]  ;;  %v2370_v28 = vpack.c.bf16 %v427_v15, %v426_v11  ;;  %v2372_v32 = vpack.c.bf16 %v445_v23, %v444_v22 }
  0x5d   :  { %2363 = vmatpush3.bf16.msra.mxu0 %v2362_v62  ;;  %v733_v16 = vld [vmem:[#allocation7 + $0x60] sm:$0xff]  ;;  %v239_v18 = vrot.slane %v2780_v12, 3  ;;  %v182_v19 = vrot.slane %v2780_v12, 2  ;;  %v734_v21 = vld [vmem:[#allocation7 + $0x68] sm:$0xff]  ;;  %v240_v24 = vrot.slane %v2782_v17, 3  ;;  %v183_v25 = vrot.slane %v2782_v17, 2 }
  0x5e   :  { %2365 = vmatprep.subr.bf16.mxu0 %v2364_v0  ;;  %v752_v27 = vld [vmem:[#allocation7 + $0xf8] sm:$0xff]  ;;  %v2402_v31 = vpack.c.bf16 %v734_v21, %v733_v16  ;;  %v428_v33 = vld [vmem:[#allocation5 + $0x70] sm:$0xff]  ;;  %v769_v38 = vld [vmem:[#allocation7 + $0x180] sm:$0xff]  ;;  %v125_v44 = vrot.slane %v2780_v12, 1  ;;  %v126_v45 = vrot.slane %v2782_v17, 1 }
  0x5f   :  { %2395 = vmatpush3.bf16.msra.mxu1 %v2394_v63  ;;  %v2789_v29 = vsel %vm238_vm0, %v239_v18, %v240_v24  ;;  %v2794_v30 = vsel %vm181_vm1, %v182_v19, %v183_v25  ;;  %v429_v34 = vld [vmem:[#allocation5 + $0x78] sm:$0xff]  ;;  %v735_v35 = vld [vmem:[#allocation7 + $0x70] sm:$0xff]  ;;  %v2404_v36 = vpack.c.bf16 %v752_v27, %v751_v26  ;;  %v770_v39 = vld [vmem:[#allocation7 + $0x188] sm:$0xff] }
  0x60   :  { %2397 = vmatprep.subr.bf16.mxu1 %v2396_v4  ;;  %3596 = vst [vmem:[#allocation15_spill] sm:$0xff] %v2789_v29  ;;  %3597 = vst [vmem:[#allocation16_spill] sm:$0xff] %v2794_v30  ;;  %510 = vmatprep.mubr.f32.mxu0 %v2789_v29  ;;  %v736_v37 = vld [vmem:[#allocation7 + $0x78] sm:$0xff]  ;;  %v1210_v40 = vld [vmem:[#allocation8 + $0x80] sm:$0xff]  ;;  %v2374_v43 = vpack.c.bf16 %v429_v34, %v428_v33  ;;  %v2408_v47 = vpack.c.bf16 %v770_v39, %v769_v38 }
  0x61   :  { %2367 = vmatpush3.bf16.msra.mxu0 %v2366_v10  ;;  %849 = vmatprep.mubr.f32.mxu1 %v2794_v30  ;;  %v1211_v41 = vld [vmem:[#allocation8 + $0x88] sm:$0xff]  ;;  %v2798_v42 = vld [vmem:[#allocation2 + $0x10] sm:$0xff]  ;;  %v2406_v46 = vpack.c.bf16 %v736_v37, %v735_v35  ;;  %v753_v48 = vld [vmem:[#allocation7 + $0x100] sm:$0xff]  ;;  %v2809_v60 = vsel %vm124_vm2, %v125_v44, %v126_v45 }
  0x62   :  { %2369 = vmatprep.subr.bf16.mxu0 %v2368_v14  ;;  %v754_v49 = vld [vmem:[#allocation7 + $0x108] sm:$0xff]  ;;  %v1194_v50 = vld [vmem:[#allocation8] sm:$0xff]  ;;  %v2440_v51 = vpack.c.bf16 %v1211_v41, %v1210_v40  ;;  %v242_v52 = vrot.slane %v2798_v42, 3  ;;  %v2803_v54 = vld [vmem:[#allocation2 + $0x18] sm:$0xff]  ;;  %v185_v56 = vrot.slane %v2798_v42, 2  ;;  %v128_v0 = vrot.slane %v2798_v42, 1 }
  0x63   :  { %2399 = vmatpush3.bf16.msra.mxu1 %v2398_v13  ;;  %v1195_v53 = vld [vmem:[#allocation8 + $0x8] sm:$0xff]  ;;  %v2805_v55 = vld [vmem:[#allocation2 + $0x20] sm:$0xff]  ;;  %v771_v57 = vld [vmem:[#allocation7 + $0x190] sm:$0xff]  ;;  %v2410_v59 = vpack.c.bf16 %v754_v49, %v753_v48  ;;  %v244_v1 = vrot.slane %v2803_v54, 3  ;;  %v187_v5 = vrot.slane %v2803_v54, 2  ;;  %v130_v18 = vrot.slane %v2803_v54, 1 }
  0x64   :  { %2401 = vmatprep.subr.bf16.mxu1 %v2400_v20  ;;  %v772_v58 = vld [vmem:[#allocation7 + $0x198] sm:$0xff]  ;;  %v1212_v61 = vld [vmem:[#allocation8 + $0x90] sm:$0xff]  ;;  %v2442_v63 = vpack.c.bf16 %v1195_v53, %v1194_v50  ;;  %v245_v2 = vrot.slane %v2805_v55, 3  ;;  %v2815_v4 = vsel %vm238_vm0, %v240_v24, %v242_v52  ;;  %v188_v6 = vrot.slane %v2805_v55, 2  ;;  %v2819_v9 = vld [vmem:[#allocation2 + $0x28] sm:$0xff] }
  0x65   :  { %2371 = vmatpush3.bf16.msra.mxu0 %v2370_v28  ;;  %v1213_v62 = vld [vmem:[#allocation8 + $0x98] sm:$0xff]  ;;  %v755_v3 = vld [vmem:[#allocation7 + $0x110] sm:$0xff]  ;;  %v2412_v7 = vpack.c.bf16 %v772_v58, %v771_v57  ;;  %v2825_v11 = vsel %vm181_vm1, %v183_v25, %v185_v56  ;;  %v773_v15 = vld [vmem:[#allocation7 + $0x1a0] sm:$0xff]  ;;  %v131_v19 = vrot.slane %v2805_v55, 1  ;;  %v2832_v22 = vsel %vm124_vm2, %v126_v45, %v128_v0 }
  0x66   :  { %2373 = vmatprep.subr.bf16.mxu0 %v2372_v32  ;;  %v756_v8 = vld [vmem:[#allocation7 + $0x118] sm:$0xff]  ;;  %v1196_v10 = vld [vmem:[#allocation8 + $0x10] sm:$0xff]  ;;  %3598 = vst [vmem:[#allocation17_spill] sm:$0xff] %v2825_v11  ;;  %v2444_v13 = vpack.c.bf16 %v1213_v62, %v1212_v61  ;;  %v774_v16 = vld [vmem:[#allocation7 + $0x1a8] sm:$0xff]  ;;  %v2835_v23 = vsel %vm238_vm0, %v244_v1, %v245_v2  ;;  %v247_v25 = vrot.slane %v2819_v9, 3  ;;  %v2844_v28 = vsel %vm181_vm1, %v187_v5, %v188_v6 }
  0x67   :  { %2403 = vmatpush3.bf16.msra.mxu1 %v2402_v31  ;;  %v1197_v14 = vld [vmem:[#allocation8 + $0x18] sm:$0xff]  ;;  %v1214_v20 = vld [vmem:[#allocation8 + $0xa0] sm:$0xff]  ;;  %v1215_v21 = vld [vmem:[#allocation8 + $0xa8] sm:$0xff]  ;;  %v2414_v24 = vpack.c.bf16 %v756_v8, %v755_v3  ;;  %3599 = vst [vmem:[#allocation18_spill] sm:$0xff] %v2844_v28  ;;  %v190_v32 = vrot.slane %v2819_v9, 2  ;;  %v2416_v33 = vpack.c.bf16 %v774_v16, %v773_v15  ;;  %v2853_v41 = vsel %vm124_vm2, %v130_v18, %v131_v19 }
  0x68   :  { %2405 = vmatprep.subr.bf16.mxu1 %v2404_v36  ;;  %v2838_v26 = vld [vmem:[#allocation2 + $0x30] sm:$0xff]  ;;  %v2840_v27 = vld [vmem:[#allocation2 + $0x38] sm:$0xff]  ;;  %v2446_v31 = vpack.c.bf16 %v1197_v14, %v1196_v10  ;;  %v757_v34 = vld [vmem:[#allocation7 + $0x120] sm:$0xff]  ;;  %v2448_v37 = vpack.c.bf16 %v1215_v21, %v1214_v20 }
  0x69   :  { %2375 = vmatpush3.bf16.msra.mxu0 %v2374_v43  ;;  %v758_v35 = vld [vmem:[#allocation7 + $0x128] sm:$0xff]  ;;  %v1198_v36 = vld [vmem:[#allocation8 + $0x20] sm:$0xff]  ;;  %v775_v39 = vld [vmem:[#allocation7 + $0x1b0] sm:$0xff]  ;;  %v133_v43 = vrot.slane %v2819_v9, 1  ;;  %v249_v44 = vrot.slane %v2838_v26, 3  ;;  %v250_v48 = vrot.slane %v2840_v27, 3  ;;  %v2866_v52 = vsel %vm181_vm1, %v188_v6, %v190_v32 }
  0x6a   :  { %2409 = vmatprep.subr.bf16.mxu0 %v2408_v47  ;;  %v1199_v38 = vld [vmem:[#allocation8 + $0x28] sm:$0xff]  ;;  %v776_v40 = vld [vmem:[#allocation7 + $0x1b8] sm:$0xff]  ;;  %v1216_v45 = vld [vmem:[#allocation8 + $0xb0] sm:$0xff]  ;;  %v2859_v47 = vsel %vm238_vm0, %v245_v2, %v247_v25  ;;  %v192_v49 = vrot.slane %v2838_v26, 2  ;;  %v2418_v50 = vpack.c.bf16 %v758_v35, %v757_v34  ;;  %3600 = vst [vmem:[#allocation19_spill] sm:$0xff] %v2866_v52  ;;  %v193_v53 = vrot.slane %v2840_v27, 2 }
  0x6b   :  { %2407 = vmatpush3.bf16.msra.mxu1 %v2406_v46  ;;  %v1217_v46 = vld [vmem:[#allocation8 + $0xb8] sm:$0xff]  ;;  %v2450_v56 = vpack.c.bf16 %v1199_v38, %v1198_v36  ;;  %v2420_v57 = vpack.c.bf16 %v776_v40, %v775_v39  ;;  %v759_v58 = vld [vmem:[#allocation7 + $0x130] sm:$0xff]  ;;  %v777_v0 = vld [vmem:[#allocation7 + $0x1c0] sm:$0xff]  ;;  %v135_v2 = vrot.slane %v2838_v26, 1  ;;  %v136_v3 = vrot.slane %v2840_v27, 1 }
  0x6c   :  { %2441 = vmatprep.subr.bf16.mxu1 %v2440_v51  ;;  %511 = vmatmul.mubr.f32.vlgmr.msra.gmra.mrb[0].mxu0 %v2794_v30  ;;  %v2863_v51 = vld [vmem:[#allocation2 + $0x40] sm:$0xff]  ;;  %v1200_v61 = vld [vmem:[#allocation8 + $0x30] sm:$0xff]  ;;  %v2452_v62 = vpack.c.bf16 %v1217_v46, %v1216_v45  ;;  %v778_v1 = vld [vmem:[#allocation7 + $0x1c8] sm:$0xff]  ;;  %v2881_v8 = vsel %vm238_vm0, %v249_v44, %v250_v48  ;;  %v2889_v16 = vsel %vm181_vm1, %v192_v49, %v193_v53 }
  0x6d   :  { %2411 = vmatpush3.bf16.msra.mxu0 %v2410_v59  ;;  %515 = vmatprep.mubr.f32.mxu0 %v2815_v4  ;;  %v760_v59 = vld [vmem:[#allocation7 + $0x138] sm:$0xff]  ;;  %v1218_v5 = vld [vmem:[#allocation8 + $0xc0] sm:$0xff]  ;;  %v1219_v6 = vld [vmem:[#allocation8 + $0xc8] sm:$0xff]  ;;  %v252_v10 = vrot.slane %v2863_v51, 3  ;;  %3601 = vst [vmem:[#allocation20_spill] sm:$0xff] %v2889_v16  ;;  %v195_v18 = vrot.slane %v2863_v51, 2  ;;  %v2424_v20 = vpack.c.bf16 %v778_v1, %v777_v0  ;;  %v2896_v35 = vsel %vm124_vm2, %v135_v2, %v136_v3 }
  0x6e   :  { %850 = vmatmul.mubr.f32.vlgmr.msra.gmra.mrb[0].mxu1 %v2809_v60  ;;  %2413 = vmatprep.subr.bf16.mxu0 %v2412_v7  ;;  %v2878_v7 = vsel %vm124_vm2, %v131_v19, %v133_v43  ;;  %v2886_v14 = vld [vmem:[#allocation2 + $0x50] sm:$0xff]  ;;  %v2422_v15 = vpack.c.bf16 %v760_v59, %v759_v58  ;;  %v761_v21 = vld [vmem:[#allocation7 + $0x140] sm:$0xff]  ;;  %v1203_v32 = vld [vmem:[#allocation8 + $0x48] sm:$0xff]  ;;  %v138_v36 = vrot.slane %v2863_v51, 1 }
  0x6f   :  { %2443 = vmatpush3.bf16.msra.mxu1 %v2442_v63  ;;  %854 = vmatprep.mubr.f32.mxu1 %v2825_v11  ;;  %v1201_v63 = vld [vmem:[#allocation8 + $0x38] sm:$0xff]  ;;  %v1202_v25 = vld [vmem:[#allocation8 + $0x40] sm:$0xff]  ;;  %v1220_v38 = vld [vmem:[#allocation8 + $0xd0] sm:$0xff]  ;;  %v2902_v40 = vsel %vm238_vm0, %v250_v48, %v252_v10  ;;  %v255_v43 = vrot.slane %v2886_v14, 3  ;;  %v2909_v49 = vsel %vm181_vm1, %v193_v53, %v195_v18  ;;  %v141_v2 = vrot.slane %v2886_v14, 1 }
  0x70   :  { %516 = vmatmul.mubr.f32.gmra.mrb[2].mxu0 %v2825_v11  ;;  %2445 = vmatprep.subr.bf16.mxu1 %v2444_v13  ;;  %v2884_v13 = vld [vmem:[#allocation2 + $0x48] sm:$0xff]  ;;  %v2454_v19 = vpack.c.bf16 %v1201_v63, %v1200_v61  ;;  %v780_v34 = vld [vmem:[#allocation7 + $0x1d8] sm:$0xff]  ;;  %3602 = vst [vmem:[#allocation21_spill] sm:$0xff] %v2909_v49  ;;  %v763_v58 = vld [vmem:[#allocation7 + $0x150] sm:$0xff]  ;;  %v2916_v53 = vsel %vm124_vm2, %v136_v3, %v138_v36 }
  0x71   :  { %520 = vmatprep.mubr.f32.mxu0 %v2835_v23  ;;  %2415 = vmatpush3.bf16.msra.mxu0 %v2414_v24  ;;  %v762_v24 = vld [vmem:[#allocation7 + $0x148] sm:$0xff]  ;;  %v1221_v39 = vld [vmem:[#allocation8 + $0xd8] sm:$0xff]  ;;  %v197_v44 = vrot.slane %v2884_v13, 2  ;;  %v1204_v59 = vld [vmem:[#allocation8 + $0x50] sm:$0xff]  ;;  %v140_v1 = vrot.slane %v2884_v13, 1 }
  0x72   :  { %855 = vmatmul.mubr.f32.gmra.mrb[2].mxu1 %v2832_v22  ;;  %2417 = vmatprep.subr.bf16.mxu0 %v2416_v33  ;;  %v779_v33 = vld [vmem:[#allocation7 + $0x1d0] sm:$0xff]  ;;  %v2906_v45 = vld [vmem:[#allocation2 + $0x58] sm:$0xff]  ;;  %v2426_v46 = vpack.c.bf16 %v762_v24, %v761_v21  ;;  %v2460_v61 = vpack.c.bf16 %v1221_v39, %v1220_v38  ;;  %v781_v63 = vld [vmem:[#allocation7 + $0x1e0] sm:$0xff] }
  0x73   :  { %859 = vmatprep.mubr.f32.mxu1 %v2844_v28  ;;  %2447 = vmatpush3.bf16.msra.mxu1 %v2446_v31  ;;  %v2456_v31 = vpack.c.bf16 %v1219_v6, %v1218_v5  ;;  %v764_v48 = vld [vmem:[#allocation7 + $0x158] sm:$0xff]  ;;  %v782_v0 = vld [vmem:[#allocation7 + $0x1e8] sm:$0xff]  ;;  %v1222_v5 = vld [vmem:[#allocation8 + $0xe0] sm:$0xff]  ;;  %v200_v18 = vrot.slane %v2906_v45, 2  ;;  %v2937_v39 = vsel %vm124_vm2, %v140_v1, %v141_v2 }
  0x74   :  { %521 = vmatmul.mubr.f32.gmra.mrb[4].mxu0 %v2844_v28  ;;  %2449 = vmatprep.subr.bf16.mxu1 %v2448_v37  ;;  %v254_v37 = vrot.slane %v2884_v13, 3  ;;  %v1223_v6 = vld [vmem:[#allocation8 + $0xe8] sm:$0xff]  ;;  %v2430_v3 = vpack.c.bf16 %v764_v48, %v763_v58  ;;  %v784_v38 = vld [vmem:[#allocation7 + $0x1f8] sm:$0xff] }
  0x75   :  { %525 = vmatprep.mubr.f32.mxu0 %v2859_v47  ;;  %2419 = vmatpush3.bf16.msra.mxu0 %v2418_v50  ;;  %v198_v50 = vrot.slane %v2886_v14, 2  ;;  %v1207_v36 = vld [vmem:[#allocation8 + $0x68] sm:$0xff]  ;;  %v1225_v58 = vld [vmem:[#allocation8 + $0xf8] sm:$0xff] }
  0x76   :  { %860 = vmatmul.mubr.f32.gmra.mrb[4].mxu1 %v2853_v41  ;;  %2421 = vmatprep.subr.bf16.mxu0 %v2420_v57  ;;  %v2428_v57 = vpack.c.bf16 %v780_v34, %v779_v33  ;;  %v2922_v10 = vsel %vm238_vm0, %v254_v37, %v255_v43  ;;  %v1206_v33 = vld [vmem:[#allocation8 + $0x60] sm:$0xff]  ;;  %v2464_v34 = vpack.c.bf16 %v1223_v6, %v1222_v5  ;;  %v783_v37 = vld [vmem:[#allocation7 + $0x1f0] sm:$0xff]  ;;  %v3074_v30 = vld [vmem:[#allocation2 + $0xb8] sm:$0xff] }
  0x77   :  { %864 = vmatprep.mubr.f32.mxu1 %v2866_v52  ;;  %2451 = vmatpush3.bf16.msra.mxu1 %v2450_v56  ;;  %v2458_v56 = vpack.c.bf16 %v1203_v32, %v1202_v25  ;;  %v2931_v21 = vsel %vm181_vm1, %v197_v44, %v198_v50  ;;  %v2432_v25 = vpack.c.bf16 %v782_v0, %v781_v63  ;;  %v766_v32 = vld [vmem:[#allocation7 + $0x168] sm:$0xff]  ;;  %v143_v44 = vrot.slane %v2906_v45, 1  ;;  %v767_v6 = vld [vmem:[#allocation7 + $0x170] sm:$0xff] }
  0x78   :  { %526 = vmatmul.mubr.f32.gmra.mrb[6].mxu0 %v2866_v52  ;;  %2453 = vmatprep.subr.bf16.mxu1 %v2452_v62  ;;  %v1205_v62 = vld [vmem:[#allocation8 + $0x58] sm:$0xff]  ;;  %3603 = vst [vmem:[#allocation22_spill] sm:$0xff] %v2931_v21  ;;  %v2466_v1 = vpack.c.bf16 %v1207_v36, %v1206_v33  ;;  %v2436_v5 = vpack.c.bf16 %v784_v38, %v783_v37  ;;  %3617 = vst [vmem:[#allocation36_spill] sm:$0xff] %v3074_v30 }
  0x79   :  { %530 = vmatprep.mubr.f32.mxu0 %v2881_v8  ;;  %2423 = vmatpush3.bf16.msra.mxu0 %v2422_v15  ;;  %v257_v15 = vrot.slane %v2906_v45, 3  ;;  %v2462_v24 = vpack.c.bf16 %v1205_v62, %v1204_v59  ;;  %v2947_v59 = vsel %vm181_vm1, %v198_v50, %v200_v18  ;;  %v1209_v50 = vld [vmem:[#allocation8 + $0x78] sm:$0xff]  ;;  %v1243_v18 = vld [vmem:[#allocation8 + $0x188] sm:$0xff] }
  0x7a   :  { %865 = vmatmul.mubr.f32.gmra.mrb[6].mxu1 %v2878_v7  ;;  %2425 = vmatprep.subr.bf16.mxu0 %v2424_v20  ;;  %v2928_v20 = vld [vmem:[#allocation2 + $0x68] sm:$0xff]  ;;  %3604 = vst [vmem:[#allocation23_spill] sm:$0xff] %v2947_v59  ;;  %v2970_v38 = vld [vmem:[#allocation2 + $0x78] sm:$0xff] }
  0x7b   :  { %869 = vmatprep.mubr.f32.mxu1 %v2889_v16  ;;  %2455 = vmatpush3.bf16.msra.mxu1 %v2454_v19  ;;  %v2926_v19 = vld [vmem:[#allocation2 + $0x60] sm:$0xff]  ;;  %v2944_v48 = vsel %vm238_vm0, %v255_v43, %v257_v15  ;;  %v203_v0 = vrot.slane %v2928_v20, 2  ;;  %v146_v33 = vrot.slane %v2928_v20, 1 }
  0x7c   :  { %531 = vmatmul.mubr.f32.gmra.mrb[8].mxu0 %v2889_v16  ;;  %2457 = vmatprep.subr.bf16.mxu1 %v2456_v31  ;;  %v765_v31 = vld [vmem:[#allocation7 + $0x160] sm:$0xff]  ;;  %v202_v63 = vrot.slane %v2926_v19, 2  ;;  %v1208_v16 = vld [vmem:[#allocation8 + $0x70] sm:$0xff] }
  0x7d   :  { %535 = vmatprep.mubr.f32.mxu0 %v2902_v40  ;;  %2427 = vmatpush3.bf16.msra.mxu0 %v2426_v46  ;;  %v259_v46 = vrot.slane %v2926_v19, 3  ;;  %v2434_v62 = vpack.c.bf16 %v766_v32, %v765_v31  ;;  %v1242_v15 = vld [vmem:[#allocation8 + $0x180] sm:$0xff]  ;;  %v1275_v31 = vld [vmem:[#allocation8 + $0x288] sm:$0xff]  ;;  %v145_v32 = vrot.slane %v2926_v19, 1 }
  0x7e   :  { %870 = vmatmul.mubr.f32.gmra.mrb[8].mxu1 %v2896_v35  ;;  %2429 = vmatprep.subr.bf16.mxu0 %v2428_v57  ;;  %v1224_v57 = vld [vmem:[#allocation8 + $0xf0] sm:$0xff]  ;;  %v2967_v37 = vsel %vm181_vm1, %v202_v63, %v203_v0 }
  0x7f   :  { %874 = vmatprep.mubr.f32.mxu1 %v2909_v49  ;;  %2459 = vmatpush3.bf16.msra.mxu1 %v2458_v56  ;;  %v260_v56 = vrot.slane %v2928_v20, 3  ;;  %v2468_v43 = vpack.c.bf16 %v1225_v58, %v1224_v57  ;;  %3605 = vst [vmem:[#allocation24_spill] sm:$0xff] %v2967_v37  ;;  %v2472_v57 = vpack.c.bf16 %v1243_v18, %v1242_v15  ;;  %v150_v15 = vrot.slane %v2970_v38, 1 }
  0x80   :  { %536 = vmatmul.mubr.f32.gmra.mrb[10].mxu0 %v2909_v49  ;;  %2461 = vmatprep.subr.bf16.mxu1 %v2460_v61  ;;  %v2949_v61 = vld [vmem:[#allocation2 + $0x70] sm:$0xff]  ;;  %v768_v49 = vld [vmem:[#allocation7 + $0x178] sm:$0xff] }
  0x81   :  { %540 = vmatprep.mubr.f32.mxu0 %v2922_v10  ;;  %2431 = vmatpush3.bf16.msra.mxu0 %v2430_v3  ;;  %v2957_v3 = vsel %vm124_vm2, %v141_v2, %v143_v44  ;;  %v2438_v36 = vpack.c.bf16 %v768_v49, %v767_v6  ;;  %v205_v2 = vrot.slane %v2949_v61, 2  ;;  %v2972_v44 = vld [vmem:[#allocation2 + $0x80] sm:$0xff]  ;;  %v148_v49 = vrot.slane %v2949_v61, 1 }
  0x82   :  { %875 = vmatmul.mubr.f32.gmra.mrb[10].mxu1 %v2916_v53  ;;  %2433 = vmatprep.subr.bf16.mxu0 %v2432_v25  ;;  %v1274_v25 = vld [vmem:[#allocation8 + $0x280] sm:$0xff]  ;;  %v207_v6 = vrot.slane %v2970_v38, 2  ;;  %v151_v18 = vrot.slane %v2972_v44, 1 }
  0x83   :  { %879 = vmatprep.mubr.f32.mxu1 %v2931_v21  ;;  %2463 = vmatpush3.bf16.msra.mxu1 %v2462_v24  ;;  %v2960_v24 = vsel %vm238_vm0, %v259_v46, %v260_v56  ;;  %v2470_v46 = vpack.c.bf16 %v1209_v50, %v1208_v16  ;;  %v2504_v58 = vpack.c.bf16 %v1275_v31, %v1274_v25  ;;  %v264_v16 = vrot.slane %v2970_v38, 3  ;;  %v2992_v50 = vld [vmem:[#allocation2 + $0x88] sm:$0xff] }
  0x84   :  { %541 = vmatmul.mubr.f32.gmra.mrb[12].mxu0 %v2931_v21  ;;  %2465 = vmatprep.subr.bf16.mxu1 %v2464_v34  ;;  %v262_v34 = vrot.slane %v2949_v61, 3  ;;  %v267_v25 = vrot.slane %v2992_v50, 3 }
  0x85   :  { %545 = vmatprep.mubr.f32.mxu0 %v2944_v48  ;;  %2435 = vmatpush3.bf16.msra.mxu0 %v2434_v62  ;;  %v2980_v62 = vsel %vm124_vm2, %v145_v32, %v146_v33  ;;  %v210_v32 = vrot.slane %v2992_v50, 2 }
  0x86   :  { %880 = vmatmul.mubr.f32.gmra.mrb[12].mxu1 %v2937_v39  ;;  %2437 = vmatprep.subr.bf16.mxu0 %v2436_v5  ;;  %v2983_v63 = vsel %vm238_vm0, %v260_v56, %v262_v34  ;;  %v2988_v5 = vsel %vm181_vm1, %v203_v0, %v205_v2  ;;  %v2998_v56 = vsel %vm124_vm2, %v146_v33, %v148_v49  ;;  %v3011_v34 = vld [vmem:[#allocation2 + $0x90] sm:$0xff]  ;;  %v3013_v33 = vld [vmem:[#allocation2 + $0x98] sm:$0xff] }
  0x87   :  { %884 = vmatprep.mubr.f32.mxu1 %v2947_v59  ;;  %2467 = vmatpush3.bf16.msra.mxu1 %v2466_v1  ;;  %v265_v1 = vrot.slane %v2972_v44, 3  ;;  %3606 = vst [vmem:[#allocation25_spill] sm:$0xff] %v2988_v5  ;;  %v3021_v2 = vsel %vm124_vm2, %v150_v15, %v151_v18  ;;  %v155_v15 = vrot.slane %v3011_v34, 1 }
  0x88   :  { %546 = vmatmul.mubr.f32.gmra.mrb[14].mxu0 %v2947_v59  ;;  %2469 = vmatprep.subr.bf16.mxu1 %v2468_v43  ;;  %v208_v43 = vrot.slane %v2972_v44, 2  ;;  %v3052_v59 = vld [vmem:[#allocation2 + $0xa8] sm:$0xff] }
  0x89   :  { %550 = vmatprep.mubr.f32.mxu0 %v2960_v24  ;;  %2439 = vmatpush3.bf16.msra.mxu0 %v2438_v36  ;;  %v3002_v0 = vsel %vm238_vm0, %v264_v16, %v265_v1  ;;  %v153_v36 = vrot.slane %v2992_v50, 1  ;;  %v212_v16 = vrot.slane %v3011_v34, 2  ;;  %3612 = vst [vmem:[#allocation31_spill] sm:$0xff] %v3052_v59  ;;  %v274_v21 = vrot.slane %v3052_v59, 3 }
  0x8a   :  { %885 = vmatmul.mubr.f32.gmra.mrb[14].mxu1 %v2957_v3  ;;  %2473 = vmatprep.subr.bf16.mxu0 %v2472_v57  ;;  %v3008_v31 = vsel %vm181_vm1, %v207_v6, %v208_v43  ;;  %v269_v57 = vrot.slane %v3011_v34, 3  ;;  %v3029_v49 = vsel %vm181_vm1, %v208_v43, %v210_v32  ;;  %v213_v6 = vrot.slane %v3013_v33, 2 }
  0x8b   :  { %889 = vmatprep.mubr.f32.mxu1 %v2967_v37  ;;  %2471 = vmatpush3.bf16.msra.mxu1 %v2470_v46  ;;  %3607 = vst [vmem:[#allocation26_spill] sm:$0xff] %v3008_v31  ;;  %v3024_v46 = vsel %vm238_vm0, %v265_v1, %v267_v25  ;;  %3609 = vst [vmem:[#allocation28_spill] sm:$0xff] %v3029_v49  ;;  %v3039_v1 = vsel %vm124_vm2, %v151_v18, %v153_v36  ;;  %v156_v25 = vrot.slane %v3013_v33, 1  ;;  %v3054_v18 = vld [vmem:[#allocation2 + $0xb0] sm:$0xff] }
  0x8c   :  { %551 = vmatmul.mubr.f32.gmra.mrb[16].mxu0 %v2967_v37  ;;  %2505 = vmatprep.subr.bf16.mxu1 %v2504_v58  ;;  %3608 = vst [vmem:[#allocation27_spill] sm:$0xff] %v3024_v46  ;;  %v270_v58 = vrot.slane %v3013_v33, 3  ;;  %3613 = vst [vmem:[#allocation32_spill] sm:$0xff] %v3054_v18  ;;  %v275_v52 = vrot.slane %v3054_v18, 3  ;;  %v217_v28 = vrot.slane %v3052_v59, 2  ;;  %v218_v11 = vrot.slane %v3054_v18, 2 }
  0x8d   :  { %555 = vmatprep.mubr.f32.mxu0 %v2983_v63 }
  0x8e   :  { %890 = vmatmul.mubr.f32.gmra.mrb[16].mxu1 %v2980_v62  ;;  %v3043_v43 = vsel %vm238_vm0, %v269_v57, %v270_v58  ;;  %v3062_v57 = vsel %vm124_vm2, %v155_v15, %v156_v25  ;;  %v161_v15 = vrot.slane %v3054_v18, 1 }
  0x8f   :  { %894 = vmatprep.mubr.f32.mxu1 %v2988_v5  ;;  %3610 = vst [vmem:[#allocation29_spill] sm:$0xff] %v3043_v43  ;;  %3614 = vst [vmem:[#allocation33_spill] sm:$0xff] %v3062_v57 }
  0x90   :  { %556 = vmatmul.mubr.f32.gmra.mrb[18].mxu0 %v2988_v5  ;;  %v3033_v5 = vld [vmem:[#allocation2 + $0xa0] sm:$0xff] }
  0x91   :  { %560 = vmatprep.mubr.f32.mxu0 %v3002_v0  ;;  %v272_v32 = vrot.slane %v3033_v5, 3  ;;  %v215_v37 = vrot.slane %v3033_v5, 2  ;;  %v158_v36 = vrot.slane %v3033_v5, 1 }
  0x92   :  { %895 = vmatmul.mubr.f32.gmra.mrb[18].mxu1 %v2998_v56 }
  0x93   :  { %899 = vmatprep.mubr.f32.mxu1 %v3008_v31 }
  0x94   :  { %561 = vmatmul.mubr.f32.gmra.mrb[20].mxu0 %v3008_v31  ;;  %v3049_v31 = vsel %vm181_vm1, %v212_v16, %v213_v6  ;;  %v3065_v16 = vsel %vm238_vm0, %v270_v58, %v272_v32  ;;  %v3080_v58 = vsel %vm124_vm2, %v156_v25, %v158_v36  ;;  %v277_v32 = vrot.slane %v3074_v30, 3 }
  0x95   :  { %565 = vmatprep.mubr.f32.mxu0 %v3024_v46  ;;  %3611 = vst [vmem:[#allocation30_spill] sm:$0xff] %v3049_v31  ;;  %3615 = vst [vmem:[#allocation34_spill] sm:$0xff] %v3065_v16  ;;  %v1260_v46 = vld [vmem:[#allocation8 + $0x210] sm:$0xff] }
  0x96   :  { %900 = vmatmul.mubr.f32.gmra.mrb[20].mxu1 %v3021_v2  ;;  %3618 = vst [vmem:[#allocation37_spill] sm:$0xff] %v3080_v58  ;;  %v3102_v36 = vsel %vm238_vm0, %v275_v52, %v277_v32  ;;  %v1226_v32 = vld [vmem:[#allocation8 + $0x100] sm:$0xff] }
  0x97   :  { %904 = vmatprep.mubr.f32.mxu1 %v3029_v49  ;;  %3622 = vst [vmem:[#allocation41_spill] sm:$0xff] %v3102_v36 }
  0x98   :  { %566 = vmatmul.mubr.f32.gmra.mrb[22].mxu0 %v3029_v49  ;;  %v3070_v49 = vsel %vm181_vm1, %v213_v6, %v215_v37  ;;  %v3084_v37 = vsel %vm238_vm0, %v274_v21, %v275_v52  ;;  %v160_v6 = vrot.slane %v3052_v59, 1  ;;  %v296_v21 = vrot.slane %v2780_v12, 4  ;;  %v1228_v59 = vld [vmem:[#allocation8 + $0x110] sm:$0xff] }
  0x99   :  { %570 = vmatprep.mubr.f32.mxu0 %v3043_v43  ;;  %3616 = vst [vmem:[#allocation35_spill] sm:$0xff] %v3070_v49  ;;  %3619 = vst [vmem:[#allocation38_spill] sm:$0xff] %v3084_v37  ;;  %v220_v43 = vrot.slane %v3074_v30, 2 }
  0x9a   :  { %905 = vmatmul.mubr.f32.gmra.mrb[22].mxu1 %v3039_v1  ;;  %v3099_v25 = vsel %vm124_vm2, %v160_v6, %v161_v15 }
  0x9b   :  { %909 = vmatprep.mubr.f32.mxu1 %v3049_v31  ;;  %3621 = vst [vmem:[#allocation40_spill] sm:$0xff] %v3099_v25 }
  0x9c   :  { %571 = vmatmul.mubr.f32.gmra.mrb[24].mxu0 %v3049_v31  ;;  %v3090_v31 = vsel %vm181_vm1, %v217_v28, %v218_v11  ;;  %v163_v28 = vrot.slane %v3074_v30, 1  ;;  %v1259_v30 = vld [vmem:[#allocation8 + $0x208] sm:$0xff] }
  0x9d   :  { %575 = vmatprep.mubr.f32.mxu0 %v3065_v16  ;;  %3620 = vst [vmem:[#allocation39_spill] sm:$0xff] %v3090_v31  ;;  %v297_v16 = vrot.slane %v2782_v17, 4 }
  0x9e   :  { %910 = vmatmul.mubr.f32.gmra.mrb[24].mxu1 %v3062_v57  ;;  %v3114_v6 = vsel %vm124_vm2, %v161_v15, %v163_v28  ;;  %v1276_v15 = vld [vmem:[#allocation8 + $0x290] sm:$0xff]  ;;  %v1277_v28 = vld [vmem:[#allocation8 + $0x298] sm:$0xff] }
  0x9f   :  { %914 = vmatprep.mubr.f32.mxu1 %v3070_v49  ;;  %3624 = vst [vmem:[#allocation43_spill] sm:$0xff] %v3114_v6  ;;  %v3117_v52 = vsel %vm295_vm3, %v296_v21, %v297_v16  ;;  %v1229_v57 = vld [vmem:[#allocation8 + $0x118] sm:$0xff] }
  0xa0   :  { %576 = vmatmul.mubr.f32.gmra.mrb[26].mxu0 %v3070_v49  ;;  %v3107_v49 = vsel %vm181_vm1, %v218_v11, %v220_v43  ;;  %3625 = vst [vmem:[#allocation44_spill] sm:$0xff] %v3117_v52  ;;  %v299_v11 = vrot.slane %v2798_v42, 4  ;;  %v1258_v43 = vld [vmem:[#allocation8 + $0x200] sm:$0xff]  ;;  %v302_v42 = vrot.slane %v2805_v55, 4 }
  0xa1   :  { %580 = vmatprep.mubr.f32.mxu0 %v3084_v37  ;;  %3623 = vst [vmem:[#allocation42_spill] sm:$0xff] %v3107_v49  ;;  %v1227_v37 = vld [vmem:[#allocation8 + $0x108] sm:$0xff]  ;;  %v2506_v21 = vpack.c.bf16 %v1259_v30, %v1258_v43  ;;  %v1278_v30 = vld [vmem:[#allocation8 + $0x2a0] sm:$0xff] }
  0xa2   :  { %915 = vmatmul.mubr.f32.gmra.mrb[26].mxu1 %v3080_v58  ;;  %v301_v58 = vrot.slane %v2803_v54, 4  ;;  %v3127_v18 = vsel %vm295_vm3, %v297_v16, %v299_v11 }
  0xa3   :  { %919 = vmatprep.mubr.f32.mxu1 %v3090_v31  ;;  %3626 = vst [vmem:[#allocation45_spill] sm:$0xff] %v3127_v18 }
  0xa4   :  { %581 = vmatmul.mubr.f32.gmra.mrb[28].mxu0 %v3090_v31  ;;  %v1244_v31 = vld [vmem:[#allocation8 + $0x190] sm:$0xff]  ;;  %v3133_v16 = vsel %vm295_vm3, %v301_v58, %v302_v42 }
  0xa5   :  { %585 = vmatprep.mubr.f32.mxu0 %v3102_v36  ;;  %v2474_v36 = vpack.c.bf16 %v1227_v37, %v1226_v32  ;;  %v1261_v37 = vld [vmem:[#allocation8 + $0x218] sm:$0xff]  ;;  %v1246_v32 = vld [vmem:[#allocation8 + $0x1a0] sm:$0xff] }
  0xa6   :  { %920 = vmatmul.mubr.f32.gmra.mrb[28].mxu1 %v3099_v25  ;;  %v1245_v25 = vld [vmem:[#allocation8 + $0x198] sm:$0xff]  ;;  %v2510_v11 = vpack.c.bf16 %v1261_v37, %v1260_v46  ;;  %v306_v46 = vrot.slane %v2838_v26, 4  ;;  %v1264_v37 = vld [vmem:[#allocation8 + $0x230] sm:$0xff] }
  0xa7   :  { %924 = vmatprep.mubr.f32.mxu1 %v3107_v49 }
  0xa8   :  { %586 = vmatmul.mubr.f32.gmra.mrb[30].mxu0 %v3107_v49  ;;  %v2476_v49 = vpack.c.bf16 %v1245_v25, %v1244_v31  ;;  %v2478_v31 = vpack.c.bf16 %v1229_v57, %v1228_v59  ;;  %v304_v25 = vrot.slane %v2819_v9, 4  ;;  %v1280_v9 = vld [vmem:[#allocation8 + $0x2b0] sm:$0xff]  ;;  %v1281_v59 = vld [vmem:[#allocation8 + $0x2b8] sm:$0xff] }
  0xa9   :  { %994 = vmatprep.mubr.f32.mxu0 %v3117_v52  ;;  %v2508_v52 = vpack.c.bf16 %v1277_v28, %v1276_v15  ;;  %v1230_v15 = vld [vmem:[#allocation8 + $0x120] sm:$0xff] }
  0xaa   :  { %925 = vmatmul.mubr.f32.gmra.mrb[30].mxu1 %v3114_v6  ;;  %v1247_v6 = vld [vmem:[#allocation8 + $0x1a8] sm:$0xff]  ;;  %v1262_v28 = vld [vmem:[#allocation8 + $0x220] sm:$0xff] }
  0xab   :  { %1354 = vmatprep.mubr.f32.mxu1 %v2809_v60  ;;  %v1279_v60 = vld [vmem:[#allocation8 + $0x2a8] sm:$0xff]  ;;  %v2480_v43 = vpack.c.bf16 %v1247_v6, %v1246_v32  ;;  %v1265_v32 = vld [vmem:[#allocation8 + $0x238] sm:$0xff] }
  0xac   :  { %995 = vmatmul.mubr.f32.vlgmr.msra.gmra.mrb[32].mxu0 %v2789_v29  ;;  %v1249_v29 = vld [vmem:[#allocation8 + $0x1b8] sm:$0xff] }
  0xad   :  { %2475 = vmatpush3.bf16.msra.mxu0 %v2474_v36  ;;  %999 = vmatprep.mubr.f32.mxu0 %v3127_v18  ;;  %v1231_v36 = vld [vmem:[#allocation8 + $0x128] sm:$0xff] }
  0xae   :  { %1355 = vmatmul.mubr.f32.vlgmr.msra.gmra.mrb[32].mxu1 %v2780_v12  ;;  %2477 = vmatprep.subr.bf16.mxu0 %v2476_v49  ;;  %v2512_v12 = vpack.c.bf16 %v1279_v60, %v1278_v30  ;;  %v1263_v18 = vld [vmem:[#allocation8 + $0x228] sm:$0xff]  ;;  %v307_v49 = vrot.slane %v2840_v27, 4  ;;  %v2482_v57 = vpack.c.bf16 %v1231_v36, %v1230_v15  ;;  %v1250_v30 = vld [vmem:[#allocation8 + $0x1c0] sm:$0xff] }
  0xaf   :  { %2507 = vmatpush3.bf16.msra.mxu1 %v2506_v21  ;;  %1359 = vmatprep.mubr.f32.mxu1 %v2832_v22  ;;  %v1248_v21 = vld [vmem:[#allocation8 + $0x1b0] sm:$0xff]  ;;  %v3142_v22 = vsel %vm295_vm3, %v302_v42, %v304_v25  ;;  %v2514_v58 = vpack.c.bf16 %v1263_v18, %v1262_v28  ;;  %v1251_v42 = vld [vmem:[#allocation8 + $0x1c8] sm:$0xff]  ;;  %v1282_v60 = vld [vmem:[#allocation8 + $0x2c0] sm:$0xff]  ;;  %v309_v18 = vrot.slane %v2863_v51, 4 }
  0xb0   :  { %1000 = vmatmul.mubr.f32.gmra.mrb[34].mxu0 %v2815_v4  ;;  %2509 = vmatprep.subr.bf16.mxu1 %v2508_v52  ;;  %v2484_v6 = vpack.c.bf16 %v1249_v29, %v1248_v21  ;;  %v1233_v52 = vld [vmem:[#allocation8 + $0x138] sm:$0xff]  ;;  %v3151_v29 = vsel %vm295_vm3, %v306_v46, %v307_v49  ;;  %v1234_v15 = vld [vmem:[#allocation8 + $0x140] sm:$0xff]  ;;  %v1235_v36 = vld [vmem:[#allocation8 + $0x148] sm:$0xff] }
  0xb1   :  { %1004 = vmatprep.mubr.f32.mxu0 %v3133_v16  ;;  %2479 = vmatpush3.bf16.msra.mxu0 %v2478_v31  ;;  %v1283_v31 = vld [vmem:[#allocation8 + $0x2c8] sm:$0xff]  ;;  %v1253_v21 = vld [vmem:[#allocation8 + $0x1d8] sm:$0xff]  ;;  %v3159_v46 = vsel %vm295_vm3, %v307_v49, %v309_v18  ;;  %v1254_v49 = vld [vmem:[#allocation8 + $0x1e0] sm:$0xff]  ;;  %v314_v18 = vrot.slane %v2906_v45, 4 }
  0xb2   :  { %1360 = vmatmul.mubr.f32.gmra.mrb[34].mxu1 %v2782_v17  ;;  %2481 = vmatprep.subr.bf16.mxu0 %v2480_v43  ;;  %v1232_v17 = vld [vmem:[#allocation8 + $0x130] sm:$0xff]  ;;  %v2488_v43 = vpack.c.bf16 %v1251_v42, %v1250_v30  ;;  %v2520_v28 = vpack.c.bf16 %v1283_v31, %v1282_v60  ;;  %v1255_v30 = vld [vmem:[#allocation8 + $0x1e8] sm:$0xff]  ;;  %v1286_v42 = vld [vmem:[#allocation8 + $0x2e0] sm:$0xff] }
  0xb3   :  { %1364 = vmatprep.mubr.f32.mxu1 %v2853_v41  ;;  %2511 = vmatpush3.bf16.msra.mxu1 %v2510_v11  ;;  %v2516_v41 = vpack.c.bf16 %v1281_v59, %v1280_v9  ;;  %v2486_v25 = vpack.c.bf16 %v1233_v52, %v1232_v17  ;;  %v2518_v11 = vpack.c.bf16 %v1265_v32, %v1264_v37  ;;  %v1284_v9 = vld [vmem:[#allocation8 + $0x2d0] sm:$0xff]  ;;  %v1285_v59 = vld [vmem:[#allocation8 + $0x2d8] sm:$0xff]  ;;  %v1287_v60 = vld [vmem:[#allocation8 + $0x2e8] sm:$0xff] }
  0xb4   :  { %1005 = vmatmul.mubr.f32.gmra.mrb[36].mxu0 %v2835_v23  ;;  %2513 = vmatprep.subr.bf16.mxu1 %v2512_v12  ;;  %v1267_v12 = vld [vmem:[#allocation8 + $0x248] sm:$0xff]  ;;  %v1237_v37 = vld [vmem:[#allocation8 + $0x158] sm:$0xff] }
  0xb5   :  { %1009 = vmatprep.mubr.f32.mxu0 %v3142_v22  ;;  %2483 = vmatpush3.bf16.msra.mxu0 %v2482_v57  ;;  %v311_v57 = vrot.slane %v2884_v13, 4  ;;  %v1269_v32 = vld [vmem:[#allocation8 + $0x258] sm:$0xff] }
  0xb6   :  { %1365 = vmatmul.mubr.f32.gmra.mrb[36].mxu1 %v2803_v54  ;;  %2485 = vmatprep.subr.bf16.mxu0 %v2484_v6  ;;  %v1266_v54 = vld [vmem:[#allocation8 + $0x240] sm:$0xff]  ;;  %v2490_v6 = vpack.c.bf16 %v1235_v36, %v1234_v15  ;;  %v1239_v36 = vld [vmem:[#allocation8 + $0x168] sm:$0xff] }
  0xb7   :  { %1369 = vmatprep.mubr.f32.mxu1 %v2878_v7  ;;  %2515 = vmatpush3.bf16.msra.mxu1 %v2514_v58  ;;  %v1252_v7 = vld [vmem:[#allocation8 + $0x1d0] sm:$0xff]  ;;  %v312_v58 = vrot.slane %v2886_v14, 4  ;;  %v2522_v17 = vpack.c.bf16 %v1267_v12, %v1266_v54  ;;  %v1238_v15 = vld [vmem:[#allocation8 + $0x160] sm:$0xff]  ;;  %v2528_v54 = vpack.c.bf16 %v1287_v60, %v1286_v42  ;;  %v1257_v12 = vld [vmem:[#allocation8 + $0x1f8] sm:$0xff]  ;;  %v322_v42 = vrot.slane %v2972_v44, 4 }
  0xb8   :  { %1010 = vmatmul.mubr.f32.gmra.mrb[38].mxu0 %v2859_v47  ;;  %2517 = vmatprep.subr.bf16.mxu1 %v2516_v41  ;;  %v2492_v52 = vpack.c.bf16 %v1253_v21, %v1252_v7  ;;  %v1268_v41 = vld [vmem:[#allocation8 + $0x250] sm:$0xff]  ;;  %v1289_v21 = vld [vmem:[#allocation8 + $0x2f8] sm:$0xff] }
  0xb9   :  { %1014 = vmatprep.mubr.f32.mxu0 %v3151_v29  ;;  %2487 = vmatpush3.bf16.msra.mxu0 %v2486_v25  ;;  %v3168_v31 = vsel %vm295_vm3, %v311_v57, %v312_v58  ;;  %v1288_v7 = vld [vmem:[#allocation8 + $0x2f0] sm:$0xff]  ;;  %v317_v57 = vrot.slane %v2928_v20, 4 }
  0xba   :  { %1370 = vmatmul.mubr.f32.gmra.mrb[38].mxu1 %v2805_v55  ;;  %2489 = vmatprep.subr.bf16.mxu0 %v2488_v43  ;;  %v1236_v55 = vld [vmem:[#allocation8 + $0x150] sm:$0xff]  ;;  %v2496_v43 = vpack.c.bf16 %v1255_v30, %v1254_v49  ;;  %v321_v30 = vrot.slane %v2970_v38, 4 }
  0xbb   :  { %1374 = vmatprep.mubr.f32.mxu1 %v2896_v35  ;;  %2519 = vmatpush3.bf16.msra.mxu1 %v2518_v11  ;;  %v2524_v35 = vpack.c.bf16 %v1285_v59, %v1284_v9  ;;  %v2494_v25 = vpack.c.bf16 %v1237_v37, %v1236_v55  ;;  %v2526_v11 = vpack.c.bf16 %v1269_v32, %v1268_v41  ;;  %v316_v59 = vrot.slane %v2926_v19, 4  ;;  %v1241_v55 = vld [vmem:[#allocation8 + $0x178] sm:$0xff] }
  0xbc   :  { %1015 = vmatmul.mubr.f32.gmra.mrb[40].mxu0 %v2881_v8  ;;  %2521 = vmatprep.subr.bf16.mxu1 %v2520_v28  ;;  %v1271_v28 = vld [vmem:[#allocation8 + $0x268] sm:$0xff]  ;;  %v3176_v9 = vsel %vm295_vm3, %v312_v58, %v314_v18  ;;  %v2532_v37 = vpack.c.bf16 %v1289_v21, %v1288_v7  ;;  %v1273_v41 = vld [vmem:[#allocation8 + $0x278] sm:$0xff]  ;;  %v3202_v60 = vsel %vm295_vm3, %v321_v30, %v322_v42  ;;  %v3633_v21 = vld [vmem:[#allocation36_spill] sm:$0xff] }
  0xbd   :  { %1019 = vmatprep.mubr.f32.mxu0 %v3159_v46  ;;  %2491 = vmatpush3.bf16.msra.mxu0 %v2490_v6  ;;  %v2498_v6 = vpack.c.bf16 %v1239_v36, %v1238_v15  ;;  %v3185_v58 = vsel %vm295_vm3, %v316_v59, %v317_v57  ;;  %v3628_v15 = vld [vmem:[#allocation33_spill] sm:$0xff]  ;;  %v334_v59 = vrot.slane %v3633_v21, 4 }
  0xbe   :  { %1375 = vmatmul.mubr.f32.gmra.mrb[40].mxu1 %v2838_v26  ;;  %2493 = vmatprep.subr.bf16.mxu0 %v2492_v52  ;;  %v1270_v26 = vld [vmem:[#allocation8 + $0x260] sm:$0xff]  ;;  %v3638_v30 = vld [vmem:[#allocation41_spill] sm:$0xff] }
  0xbf   :  { %1379 = vmatprep.mubr.f32.mxu1 %v2916_v53  ;;  %2523 = vmatpush3.bf16.msra.mxu1 %v2522_v17  ;;  %v1256_v53 = vld [vmem:[#allocation8 + $0x1f0] sm:$0xff]  ;;  %v2530_v17 = vpack.c.bf16 %v1271_v28, %v1270_v26  ;;  %v3629_v26 = vld [vmem:[#allocation31_spill] sm:$0xff]  ;;  %v3630_v28 = vld [vmem:[#allocation32_spill] sm:$0xff] }
  0xc0   :  { %1020 = vmatmul.mubr.f32.gmra.mrb[42].mxu0 %v2902_v40  ;;  %2525 = vmatprep.subr.bf16.mxu1 %v2524_v35  ;;  %v2500_v52 = vpack.c.bf16 %v1257_v12, %v1256_v53  ;;  %v319_v35 = vrot.slane %v2949_v61, 4  ;;  %v3631_v53 = vld [vmem:[#allocation29_spill] sm:$0xff] }
  0xc1   :  { %1024 = vmatprep.mubr.f32.mxu0 %v3168_v31  ;;  %2495 = vmatpush3.bf16.msra.mxu0 %v2494_v25  ;;  %v326_v25 = vrot.slane %v3011_v34, 4  ;;  %v3632_v12 = vld [vmem:[#allocation37_spill] sm:$0xff] }
  0xc2   :  { %1380 = vmatmul.mubr.f32.gmra.mrb[42].mxu1 %v2840_v27  ;;  %2497 = vmatprep.subr.bf16.mxu0 %v2496_v43  ;;  %v1240_v27 = vld [vmem:[#allocation8 + $0x170] sm:$0xff]  ;;  %v3627_v43 = vld [vmem:[#allocation27_spill] sm:$0xff] }
  0xc3   :  { %1384 = vmatprep.mubr.f32.mxu1 %v2937_v39  ;;  %2527 = vmatpush3.bf16.msra.mxu1 %v2526_v11  ;;  %v1272_v39 = vld [vmem:[#allocation8 + $0x270] sm:$0xff]  ;;  %v2502_v32 = vpack.c.bf16 %v1241_v55, %v1240_v27  ;;  %v2544_v55 = vld [vmem:[#allocation2 + $0x8] sm:$0xff] }
  0xc4   :  { %1025 = vmatmul.mubr.f32.gmra.mrb[44].mxu0 %v2922_v10  ;;  %2529 = vmatprep.subr.bf16.mxu1 %v2528_v54  ;;  %v2534_v49 = vpack.c.bf16 %v1273_v41, %v1272_v39  ;;  %v331_v54 = vrot.slane %v3629_v26, 4  ;;  %v3636_v39 = vld [vmem:[#allocation38_spill] sm:$0xff]  ;;  %v3637_v41 = vld [vmem:[#allocation43_spill] sm:$0xff] }
  0xc5   :  { %1029 = vmatprep.mubr.f32.mxu0 %v3176_v9  ;;  %2499 = vmatpush3.bf16.msra.mxu0 %v2498_v6  ;;  %v3635_v6 = vld [vmem:[#allocation40_spill] sm:$0xff] }
  0xc6   :  { %1385 = vmatmul.mubr.f32.gmra.mrb[44].mxu1 %v2884_v13  ;;  %2501 = vmatprep.subr.bf16.mxu0 %v2500_v52  ;;  %v2543_v52 = vld [vmem:[#allocation2] sm:$0xff] }
  0xc7   :  { %1389 = vmatprep.mubr.f32.mxu1 %v2957_v3  ;;  %2531 = vmatpush3.bf16.msra.mxu1 %v2530_v17  ;;  %v3193_v3 = vsel %vm295_vm3, %v317_v57, %v319_v35  ;;  %v3634_v57 = vld [vmem:[#allocation34_spill] sm:$0xff]  ;;  %v353_v27 = vrot.slane %v2543_v52, 5  ;;  %v3642_v52 = vld [vmem:[#allocation17_spill] sm:$0xff] }
  0xc8   :  { %1030 = vmatmul.mubr.f32.gmra.mrb[46].mxu0 %v2944_v48  ;;  %2533 = vmatprep.subr.bf16.mxu1 %v2532_v37  ;;  %v354_v37 = vrot.slane %v2544_v55, 5 }
  0xc9   :  { %1034 = vmatprep.mubr.f32.mxu0 %v3185_v58  ;;  %2503 = vmatpush3.bf16.msra.mxu0 %v2502_v32  ;;  %v2545_v32 = vld [vmem:[#allocation2 + $0x10] sm:$0xff] }
  0xca   :  { %1390 = vmatmul.mubr.f32.gmra.mrb[46].mxu1 %v2886_v14  ;;  %v355_v35 = vsel %vm352_vm4, %v353_v27, %v354_v37  ;;  %v3643_v27 = vld [vmem:[#allocation45_spill] sm:$0xff] }
  0xcb   :  { %1394 = vmatprep.mubr.f32.mxu1 %v2980_v62  ;;  %2535 = vmatpush3.bf16.msra.mxu1 %v2534_v49  ;;  %v324_v62 = vrot.slane %v2992_v50, 4  ;;  %v356_v49 = vrot.slane %v2545_v32, 5 }
  0xcc   :  { %1035 = vmatmul.mubr.f32.gmra.mrb[48].mxu0 %v2960_v24 }
  0xcd   :  { %1039 = vmatprep.mubr.f32.mxu0 %v3193_v3  ;;  %v3210_v18 = vsel %vm295_vm3, %v322_v42, %v324_v62  ;;  %v3639_v42 = vld [vmem:[#allocation15_spill] sm:$0xff]  ;;  %v357_v62 = vsel %vm352_vm4, %v354_v37, %v356_v49  ;;  %v2549_v37 = vld [vmem:[#allocation2 + $0x30] sm:$0xff] }
  0xce   :  { %1395 = vmatmul.mubr.f32.gmra.mrb[48].mxu1 %v2926_v19  ;;  %v3644_v49 = vld [vmem:[#allocation18_spill] sm:$0xff] }
  0xcf   :  { %1399 = vmatprep.mubr.f32.mxu1 %v2998_v56  ;;  %v327_v56 = vrot.slane %v3013_v33, 4 }
  0xd0   :  { %1040 = vmatmul.mubr.f32.gmra.mrb[50].mxu0 %v2983_v63 }
  0xd1   :  { %1044 = vmatprep.mubr.f32.mxu0 %v3202_v60  ;;  %v3219_v11 = vsel %vm295_vm3, %v326_v25, %v327_v56  ;;  %v2546_v25 = vld [vmem:[#allocation2 + $0x18] sm:$0xff] }
  0xd2   :  { %1400 = vmatmul.mubr.f32.gmra.mrb[50].mxu1 %v2928_v20 }
  0xd3   :  { %1404 = vmatprep.mubr.f32.mxu1 %v3021_v2  ;;  %v329_v2 = vrot.slane %v3033_v5, 4 }
  0xd4   :  { %1045 = vmatmul.mubr.f32.gmra.mrb[52].mxu0 %v3002_v0 }
  0xd5   :  { %1049 = vmatprep.mubr.f32.mxu0 %v3210_v18  ;;  %v3227_v36 = vsel %vm295_vm3, %v327_v56, %v329_v2  ;;  %v358_v56 = vrot.slane %v2546_v25, 5  ;;  %v2547_v2 = vld [vmem:[#allocation2 + $0x20] sm:$0xff]  ;;  %v368_v25 = vrot.slane %v2884_v13, 5  ;;  %v373_v13 = vrot.slane %v2926_v19, 5 }
  0xd6   :  { %1405 = vmatmul.mubr.f32.gmra.mrb[52].mxu1 %v2970_v38  ;;  %v378_v19 = vrot.slane %v2970_v38, 5  ;;  %v383_v38 = vrot.slane %v3011_v34, 5 }
  0xd7   :  { %1409 = vmatprep.mubr.f32.mxu1 %v3039_v1  ;;  %v332_v1 = vrot.slane %v3630_v28, 4 }
  0xd8   :  { %1050 = vmatmul.mubr.f32.gmra.mrb[54].mxu0 %v3627_v43 }
  0xd9   :  { %1054 = vmatprep.mubr.f32.mxu0 %v3219_v11  ;;  %v3236_v7 = vsel %vm295_vm3, %v331_v54, %v332_v1  ;;  %v3244_v17 = vsel %vm295_vm3, %v332_v1, %v334_v59  ;;  %v3640_v54 = vld [vmem:[#allocation16_spill] sm:$0xff]  ;;  %v2548_v59 = vld [vmem:[#allocation2 + $0x28] sm:$0xff] }
  0xda   :  { %1410 = vmatmul.mubr.f32.gmra.mrb[54].mxu1 %v2972_v44  ;;  %v3641_v1 = vld [vmem:[#allocation44_spill] sm:$0xff] }
  0xdb   :  { %1414 = vmatprep.mubr.f32.mxu1 %v3628_v15  ;;  %v359_v15 = vrot.slane %v2547_v2, 5 }
  0xdc   :  { %1055 = vmatmul.mubr.f32.gmra.mrb[56].mxu0 %v3631_v53 }
  0xdd   :  { %1059 = vmatprep.mubr.f32.mxu0 %v3227_v36 }
  0xde   :  { %1415 = vmatmul.mubr.f32.gmra.mrb[56].mxu1 %v3011_v34  ;;  %v388_v34 = vrot.slane %v3629_v26, 5 }
  0xdf   :  { %1419 = vmatprep.mubr.f32.mxu1 %v3632_v12  ;;  %v360_v12 = vsel %vm352_vm4, %v358_v56, %v359_v15  ;;  %v3646_v56 = vld [vmem:[#allocation20_spill] sm:$0xff] }
  0xe0   :  { %1060 = vmatmul.mubr.f32.gmra.mrb[58].mxu0 %v3634_v57 }
  0xe1   :  { %1064 = vmatprep.mubr.f32.mxu0 %v3236_v7 }
  0xe2   :  { %1420 = vmatmul.mubr.f32.gmra.mrb[58].mxu1 %v3013_v33 }
  0xe3   :  { %1424 = vmatprep.mubr.f32.mxu1 %v3635_v6  ;;  %v361_v6 = vrot.slane %v2548_v59, 5 }
  0xe4   :  { %1065 = vmatmul.mubr.f32.gmra.mrb[60].mxu0 %v3636_v39 }
  0xe5   :  { %1069 = vmatprep.mubr.f32.mxu0 %v3244_v17  ;;  %v362_v55 = vsel %vm352_vm4, %v359_v15, %v361_v6 }
  0xe6   :  { %1425 = vmatmul.mubr.f32.gmra.mrb[60].mxu1 %v3629_v26 }
  0xe7   :  { %1429 = vmatprep.mubr.f32.mxu1 %v3637_v41  ;;  %v363_v41 = vrot.slane %v2549_v37, 5 }
  0xe8   :  { %1070 = vmatmul.mubr.f32.gmra.mrb[62].mxu0 %v3638_v30 }
  0xe9   :  { %1499 = vmatprep.mubr.f32.mxu0 %v3639_v42  ;;  %v366_v42 = vrot.slane %v2863_v51, 5  ;;  %v371_v51 = vrot.slane %v2906_v45, 5  ;;  %v376_v45 = vrot.slane %v2949_v61, 5  ;;  %v381_v61 = vrot.slane %v2992_v50, 5 }
  0xea   :  { %1430 = vmatmul.mubr.f32.gmra.mrb[62].mxu1 %v3630_v28  ;;  %v386_v50 = vrot.slane %v3033_v5, 5 }
  0xeb   :  { %1644 = vmatprep.mubr.f32.mxu1 %v355_v35  ;;  %v2550_v35 = vld [vmem:[#allocation2 + $0x38] sm:$0xff] }
  0xec   :  { %1500 = vmatmul.mubr.f32.vlgmr.msra.gmra.mrb[64].mxu0 %v3640_v54  ;;  %v364_v32 = vrot.slane %v2550_v35, 5 }
  0xed   :  { %1504 = vmatprep.mubr.f32.mxu0 %v2815_v4 }
  0xee   :  { %1645 = vmatmul.mubr.f32.vlgmr.msra.gmra.mrb[64].mxu1 %v3641_v1  ;;  %v365_v4 = vsel %vm352_vm4, %v363_v41, %v364_v32 }
  0xef   :  { %1649 = vmatprep.mubr.f32.mxu1 %v357_v62  ;;  %v3645_v62 = vld [vmem:[#allocation19_spill] sm:$0xff] }
  0xf0   :  { %1505 = vmatmul.mubr.f32.gmra.mrb[66].mxu0 %v3642_v52 }
  0xf1   :  { %1509 = vmatprep.mubr.f32.mxu0 %v2835_v23  ;;  %v367_v23 = vsel %vm352_vm4, %v364_v32, %v366_v42 }
  0xf2   :  { %1650 = vmatmul.mubr.f32.gmra.mrb[66].mxu1 %v3643_v27 }
  0xf3   :  { %1654 = vmatprep.mubr.f32.mxu1 %v360_v12 }
  0xf4   :  { %1510 = vmatmul.mubr.f32.gmra.mrb[68].mxu0 %v3644_v49 }
  0xf5   :  { %1514 = vmatprep.mubr.f32.mxu0 %v2859_v47 }
  0xf6   :  { %1655 = vmatmul.mubr.f32.gmra.mrb[68].mxu1 %v3133_v16  ;;  %v369_v16 = vrot.slane %v2886_v14, 5  ;;  %v374_v14 = vrot.slane %v2928_v20, 5  ;;  %v379_v20 = vrot.slane %v2972_v44, 5  ;;  %v384_v44 = vrot.slane %v3013_v33, 5 }
  0xf7   :  { %1659 = vmatprep.mubr.f32.mxu1 %v362_v55  ;;  %v389_v33 = vrot.slane %v3630_v28, 5  ;;  %v3656_v28 = vld [vmem:[#allocation39_spill] sm:$0xff] }
  0xf8   :  { %1515 = vmatmul.mubr.f32.gmra.mrb[70].mxu0 %v3645_v62  ;;  %v370_v47 = vsel %vm352_vm4, %v368_v25, %v369_v16 }
  0xf9   :  { %1519 = vmatprep.mubr.f32.mxu0 %v2881_v8  ;;  %v372_v8 = vsel %vm352_vm4, %v369_v16, %v371_v51  ;;  %v390_v5 = vsel %vm352_vm4, %v388_v34, %v389_v33 }
  0xfa   :  { %1660 = vmatmul.mubr.f32.gmra.mrb[70].mxu1 %v3142_v22  ;;  %v3647_v22 = vld [vmem:[#allocation21_spill] sm:$0xff] }
  0xfb   :  { %1664 = vmatprep.mubr.f32.mxu1 %v365_v4 }
  0xfc   :  { %1520 = vmatmul.mubr.f32.gmra.mrb[72].mxu0 %v3646_v56 }
  0xfd   :  { %1524 = vmatprep.mubr.f32.mxu0 %v2902_v40  ;;  %v375_v40 = vsel %vm352_vm4, %v373_v13, %v374_v14 }
  0xfe   :  { %1665 = vmatmul.mubr.f32.gmra.mrb[72].mxu1 %v3151_v29  ;;  %v3648_v29 = vld [vmem:[#allocation22_spill] sm:$0xff] }
  0xff   :  { %1669 = vmatprep.mubr.f32.mxu1 %v367_v23 }
 0x100   :  { %1525 = vmatmul.mubr.f32.gmra.mrb[74].mxu0 %v3647_v22 }
 0x101   :  { %1529 = vmatprep.mubr.f32.mxu0 %v2922_v10  ;;  %v377_v10 = vsel %vm352_vm4, %v374_v14, %v376_v45 }
 0x102   :  { %1670 = vmatmul.mubr.f32.gmra.mrb[74].mxu1 %v3159_v46  ;;  %v3649_v46 = vld [vmem:[#allocation23_spill] sm:$0xff] }
 0x103   :  { %1674 = vmatprep.mubr.f32.mxu1 %v370_v47 }
 0x104   :  { %1530 = vmatmul.mubr.f32.gmra.mrb[76].mxu0 %v3648_v29 }
 0x105   :  { %1534 = vmatprep.mubr.f32.mxu0 %v2944_v48  ;;  %v380_v48 = vsel %vm352_vm4, %v378_v19, %v379_v20 }
 0x106   :  { %1675 = vmatmul.mubr.f32.gmra.mrb[76].mxu1 %v3168_v31  ;;  %v3650_v31 = vld [vmem:[#allocation24_spill] sm:$0xff] }
 0x107   :  { %1679 = vmatprep.mubr.f32.mxu1 %v372_v8 }
 0x108   :  { %1535 = vmatmul.mubr.f32.gmra.mrb[78].mxu0 %v3649_v46 }
 0x109   :  { %1539 = vmatprep.mubr.f32.mxu0 %v2960_v24  ;;  %v382_v24 = vsel %vm352_vm4, %v379_v20, %v381_v61 }
 0x10a   :  { %1680 = vmatmul.mubr.f32.gmra.mrb[78].mxu1 %v3176_v9  ;;  %v3651_v9 = vld [vmem:[#allocation25_spill] sm:$0xff] }
 0x10b   :  { %1684 = vmatprep.mubr.f32.mxu1 %v375_v40 }
 0x10c   :  { %1540 = vmatmul.mubr.f32.gmra.mrb[80].mxu0 %v3650_v31 }
 0x10d   :  { %1544 = vmatprep.mubr.f32.mxu0 %v2983_v63  ;;  %v385_v63 = vsel %vm352_vm4, %v383_v38, %v384_v44 }
 0x10e   :  { %1685 = vmatmul.mubr.f32.gmra.mrb[80].mxu1 %v3185_v58  ;;  %v3652_v58 = vld [vmem:[#allocation26_spill] sm:$0xff] }
 0x10f   :  { %1689 = vmatprep.mubr.f32.mxu1 %v377_v10 }
 0x110   :  { %1545 = vmatmul.mubr.f32.gmra.mrb[82].mxu0 %v3651_v9 }
 0x111   :  { %1549 = vmatprep.mubr.f32.mxu0 %v3002_v0  ;;  %v387_v0 = vsel %vm352_vm4, %v384_v44, %v386_v50 }
 0x112   :  { %1690 = vmatmul.mubr.f32.gmra.mrb[82].mxu1 %v3193_v3  ;;  %v3653_v3 = vld [vmem:[#allocation28_spill] sm:$0xff] }
 0x113   :  { %1694 = vmatprep.mubr.f32.mxu1 %v380_v48 }
 0x114   :  { %1550 = vmatmul.mubr.f32.gmra.mrb[84].mxu0 %v3652_v58 }
 0x115   :  { %1554 = vmatprep.mubr.f32.mxu0 %v3627_v43  ;;  %v3655_v43 = vld [vmem:[#allocation35_spill] sm:$0xff] }
 0x116   :  { %1695 = vmatmul.mubr.f32.gmra.mrb[84].mxu1 %v3202_v60  ;;  %v3654_v60 = vld [vmem:[#allocation30_spill] sm:$0xff] }
 0x117   :  { %1699 = vmatprep.mubr.f32.mxu1 %v382_v24 }
 0x118   :  { %1555 = vmatmul.mubr.f32.gmra.mrb[86].mxu0 %v3653_v3 }
 0x119   :  { %1559 = vmatprep.mubr.f32.mxu0 %v3631_v53  ;;  %v409_v53 = vlaneseq }
 0x11a   :  { %1700 = vmatmul.mubr.f32.gmra.mrb[86].mxu1 %v3210_v18  ;;  %v391_v18 = vrot.slane %v3633_v21, 5 }
 0x11b   :  { %1704 = vmatprep.mubr.f32.mxu1 %v385_v63  ;;  %v410_v21 = vshrl.u32 %v409_v53, 7 }
 0x11c   :  { %1560 = vmatmul.mubr.f32.gmra.mrb[88].mxu0 %v3654_v60  ;;  %v392_v26 = vsel %vm352_vm4, %v389_v33, %v391_v18 }
 0x11d   :  { %1564 = vmatprep.mubr.f32.mxu0 %v3634_v57 }
 0x11e   :  { %1705 = vmatmul.mubr.f32.gmra.mrb[88].mxu1 %v3219_v11  ;;  %v3657_v11 = vld [vmem:[#allocation42_spill] sm:$0xff] }
 0x11f   :  { %1709 = vmatprep.mubr.f32.mxu1 %v387_v0 }
 0x120   :  { %1565 = vmatmul.mubr.f32.gmra.mrb[90].mxu0 %v3655_v43  ;;  %v3356_v43 = vld [vmem:[%s3555_s4] ss:$0 sm:$0xff] }
 0x121   :  { %1569 = vmatprep.mubr.f32.mxu0 %v3636_v39  ;;  %v3332_v39 = vadd.s32 8, %v410_v21 }
 0x122   :  { %1710 = vmatmul.mubr.f32.gmra.mrb[90].mxu1 %v3227_v36 }
 0x123   :  { %1714 = vmatprep.mubr.f32.mxu1 %v390_v5  ;;  %vm413_vm5 = vcmp.lt.s32.totalorder %v3332_v39, 9 }
 0x124   :  { %1570 = vmatmul.mubr.f32.gmra.mrb[92].mxu0 %v3656_v28 }
 0x125   :  { %1574 = vmatprep.mubr.f32.mxu0 %v3638_v30 }
 0x126   :  { %1715 = vmatmul.mubr.f32.gmra.mrb[92].mxu1 %v3236_v7 }
 0x127   :  { %1719 = vmatprep.mubr.f32.mxu1 %v392_v26 }
 0x128   :  { %1575 = vmatmul.mubr.f32.gmra.mrb[94].mxu0 %v3657_v11 }
 0x12a   :  { %1720 = vmatmul.mubr.f32.gmra.mrb[94].mxu1 %v3244_v17 }
 0x13f   :  { %v1896_v57 = vpop.f32.mrb[0].mxu0 }
 0x140   :  { %v1897_v36 = vpop.f32.mrb[1].mxu0 }
 0x141   :  { %v1976_v2 = vpop.f32.mrb[0].mxu1  ;;  %v1898_v15 = vadd.f32 %v1897_v36, %v1896_v57 }
 0x142   :  { %v1977_v54 = vpop.f32.mrb[1].mxu1 }
 0x143   :  { %v3334_v1 = vadd.f32 %v1977_v54, %v1976_v2  ;;  %v1899_v12 = vpop.f32.mrb[2].mxu0 }
 0x144   :  { %v1900_v7 = vpop.f32.mrb[3].mxu0 }
 0x145   :  { %v1979_v30 = vpop.f32.mrb[2].mxu1  ;;  %v1901_v59 = vadd.f32 %v1900_v7, %v1899_v12 }
 0x146   :  { %v1980_v6 = vpop.f32.mrb[3].mxu1 }
 0x147   :  { %v3337_v52 = vadd.f32 %v1980_v6, %v1979_v30  ;;  %v596_v17 = vsel %vm413_vm5, %v1901_v59, -inf  ;;  %v1902_v27 = vpop.f32.mrb[4].mxu0 }
 0x148   :  { %v611_v55 = vmax.f32 %v1898_v15, %v596_v17  ;;  %v1903_v37 = vpop.f32.mrb[5].mxu0 }
 0x149   :  { %v1982_v41 = vpop.f32.mrb[4].mxu1  ;;  %v1904_v35 = vadd.f32 %v1903_v37, %v1902_v27 }
 0x14a   :  { %v1983_v32 = vpop.f32.mrb[5].mxu1  ;;  %v612_v49 = vrot.slane %v611_v55, 4 }
 0x14b   :  { %v3341_v4 = vadd.f32 %v1983_v32, %v1982_v41  ;;  %v1905_v42 = vpop.f32.mrb[6].mxu0 }
 0x14c   :  { %v613_v62 = vmax.f32 %v611_v55, %v612_v49  ;;  %v1906_v23 = vpop.f32.mrb[7].mxu0 }
 0x14d   :  { %v1985_v25 = vpop.f32.mrb[6].mxu1  ;;  %v1907_v16 = vadd.f32 %v1906_v23, %v1905_v42 }
 0x14e   :  { %v1986_v56 = vpop.f32.mrb[7].mxu1  ;;  %v614_v47 = vrot.slane %v613_v62, 2 }
 0x14f   :  { %v3343_v51 = vadd.f32 %v1986_v56, %v1985_v25  ;;  %v598_v22 = vsel %vm413_vm5, %v1907_v16, -inf  ;;  %v1908_v8 = vpop.f32.mrb[8].mxu0 }
 0x150   :  { %v618_v13 = vmax.f32 %v1904_v35, %v598_v22  ;;  %v1909_v14 = vpop.f32.mrb[9].mxu0  ;;  %v615_v40 = vmax.f32 %v613_v62, %v614_v47 }
 0x151   :  { %v1988_v29 = vpop.f32.mrb[8].mxu1  ;;  %v1910_v45 = vadd.f32 %v1909_v14, %v1908_v8 }
 0x152   :  { %v1989_v46 = vpop.f32.mrb[9].mxu1  ;;  %v619_v10 = vrot.slane %v618_v13, 4  ;;  %v616_v9 = vrot.slane %v615_v40, 1 }
 0x153   :  { %v3347_v19 = vadd.f32 %v1989_v46, %v1988_v29  ;;  %v1911_v20 = vpop.f32.mrb[10].mxu0 }
 0x154   :  { %v620_v31 = vmax.f32 %v618_v13, %v619_v10  ;;  %v1912_v48 = vpop.f32.mrb[11].mxu0  ;;  %v617_v60 = vmax.f32 %v615_v40, %v616_v9 }
 0x155   :  { %v1991_v61 = vpop.f32.mrb[10].mxu1  ;;  %v1913_v24 = vadd.f32 %v1912_v48, %v1911_v20 }
 0x156   :  { %v1992_v38 = vpop.f32.mrb[11].mxu1  ;;  %v621_v44 = vrot.slane %v620_v31, 2  ;;  %v674_v15 = vadd.f32 %v3356_v43, %v617_v60 }
 0x157   :  { %v3349_v58 = vadd.f32 %v1992_v38, %v1991_v61  ;;  %v600_v63 = vsel %vm413_vm5, %v1913_v24, -inf  ;;  %v1914_v50 = vpop.f32.mrb[12].mxu0 }
 0x158   :  { %v622_v3 = vmax.f32 %v620_v31, %v621_v44  ;;  %v625_v0 = vmax.f32 %v1910_v45, %v600_v63  ;;  %v1915_v34 = vpop.f32.mrb[13].mxu0  ;;  %v682_v32 = vmax.f32 %v674_v15, 0.0 }
 0x159   :  { %v1994_v33 = vpop.f32.mrb[12].mxu1  ;;  %v1916_v5 = vadd.f32 %v1915_v34, %v1914_v50 }
 0x15a   :  { %v1995_v18 = vpop.f32.mrb[13].mxu1  ;;  %v623_v26 = vrot.slane %v622_v3, 1  ;;  %v626_v28 = vrot.slane %v625_v0, 4 }
 0x15b   :  { %v3358_v11 = vadd.f32 %v1995_v18, %v1994_v33  ;;  %v1917_v53 = vpop.f32.mrb[14].mxu0 }
 0x15c   :  { %v624_v21 = vmax.f32 %v622_v3, %v623_v26  ;;  %v627_v57 = vmax.f32 %v625_v0, %v626_v28  ;;  %v1918_v36 = vpop.f32.mrb[15].mxu0 }
 0x15d   :  { %v1997_v2 = vpop.f32.mrb[14].mxu1  ;;  %v1919_v54 = vadd.f32 %v1918_v36, %v1917_v53 }
 0x15e   :  { %v1998_v12 = vpop.f32.mrb[15].mxu1  ;;  %v675_v7 = vadd.f32 %v3356_v43, %v624_v21  ;;  %v628_v30 = vrot.slane %v627_v57, 2 }
 0x15f   :  { %v3362_v59 = vadd.f32 %v1998_v12, %v1997_v2  ;;  %v602_v6 = vsel %vm413_vm5, %v1919_v54, -inf  ;;  %v1920_v17 = vpop.f32.mrb[16].mxu0 }
 0x160   :  { %v683_v27 = vmax.f32 %v675_v7, 0.0  ;;  %v629_v55 = vmax.f32 %v627_v57, %v628_v30  ;;  %v632_v37 = vmax.f32 %v1916_v5, %v602_v6  ;;  %v1921_v41 = vpop.f32.mrb[17].mxu0 }
 0x161   :  { %v2000_v35 = vpop.f32.mrb[16].mxu1  ;;  %v1922_v49 = vadd.f32 %v1921_v41, %v1920_v17 }
 0x162   :  { %v2001_v42 = vpop.f32.mrb[17].mxu1  ;;  %v698_v62 = vrot.slane %v683_v27, 7  ;;  %v630_v23 = vrot.slane %v629_v55, 1  ;;  %v633_v25 = vrot.slane %v632_v37, 4 }
 0x163   :  { %v3366_v16 = vadd.f32 %v2001_v42, %v2000_v35  ;;  %v1923_v56 = vpop.f32.mrb[18].mxu0 }
 0x164   :  { %v700_v47 = vsel %vm699_vm6, %v698_v62, %v682_v32  ;;  %v631_v22 = vmax.f32 %v629_v55, %v630_v23  ;;  %v634_v8 = vmax.f32 %v632_v37, %v633_v25  ;;  %v1924_v13 = vpop.f32.mrb[19].mxu0 }
 0x165   :  { %v2003_v14 = vpop.f32.mrb[18].mxu1  ;;  %v1925_v29 = vadd.f32 %v1924_v13, %v1923_v56 }
 0x166   :  { %v2004_v40 = vpop.f32.mrb[19].mxu1  ;;  %v676_v45 = vadd.f32 %v3356_v43, %v631_v22  ;;  %v635_v46 = vrot.slane %v634_v8, 2 }
 0x167   :  { %v3370_v10 = vadd.f32 %v2004_v40, %v2003_v14  ;;  %v604_v20 = vsel %vm413_vm5, %v1925_v29, -inf  ;;  %v1926_v31 = vpop.f32.mrb[20].mxu0 }
 0x168   :  { %v684_v48 = vmax.f32 %v676_v45, 0.0  ;;  %v636_v61 = vmax.f32 %v634_v8, %v635_v46  ;;  %v639_v9 = vmax.f32 %v1922_v49, %v604_v20  ;;  %v1927_v24 = vpop.f32.mrb[21].mxu0 }
 0x169   :  { %v2006_v38 = vpop.f32.mrb[20].mxu1  ;;  %v1928_v44 = vadd.f32 %v1927_v24, %v1926_v31 }
 0x16a   :  { %v2007_v63 = vpop.f32.mrb[21].mxu1  ;;  %v701_v50 = vrot.slane %v684_v48, 6  ;;  %v637_v3 = vrot.slane %v636_v61, 1  ;;  %v640_v0 = vrot.slane %v639_v9, 4 }
 0x16b   :  { %v3374_v34 = vadd.f32 %v2007_v63, %v2006_v38  ;;  %v1929_v33 = vpop.f32.mrb[22].mxu0 }
 0x16c   :  { %v703_v60 = vsel %vm702_vm7, %v701_v50, %v700_v47  ;;  %v638_v5 = vmax.f32 %v636_v61, %v637_v3  ;;  %v641_v18 = vmax.f32 %v639_v9, %v640_v0  ;;  %v1930_v26 = vpop.f32.mrb[23].mxu0 }
 0x16d   :  { %v2009_v28 = vpop.f32.mrb[22].mxu1  ;;  %v1931_v53 = vadd.f32 %v1930_v26, %v1929_v33 }
 0x16e   :  { %v2010_v21 = vpop.f32.mrb[23].mxu1  ;;  %v677_v57 = vadd.f32 %v3356_v43, %v638_v5  ;;  %v642_v36 = vrot.slane %v641_v18, 2 }
 0x16f   :  { %v3378_v2 = vadd.f32 %v2010_v21, %v2009_v28  ;;  %v606_v15 = vsel %vm413_vm5, %v1931_v53, -inf  ;;  %v1932_v54 = vpop.f32.mrb[24].mxu0 }
 0x170   :  { %v685_v12 = vmax.f32 %v677_v57, 0.0  ;;  %v643_v7 = vmax.f32 %v641_v18, %v642_v36  ;;  %v646_v30 = vmax.f32 %v1928_v44, %v606_v15  ;;  %v1933_v6 = vpop.f32.mrb[25].mxu0 }
 0x171   :  { %v2012_v17 = vpop.f32.mrb[24].mxu1  ;;  %v1934_v27 = vadd.f32 %v1933_v6, %v1932_v54 }
 0x172   :  { %v2013_v55 = vpop.f32.mrb[25].mxu1  ;;  %v704_v37 = vrot.slane %v685_v12, 5  ;;  %v644_v41 = vrot.slane %v643_v7, 1  ;;  %v647_v35 = vrot.slane %v646_v30, 4 }
 0x173   :  { %v3382_v32 = vadd.f32 %v2013_v55, %v2012_v17  ;;  %v1935_v49 = vpop.f32.mrb[26].mxu0 }
 0x174   :  { %v645_v42 = vmax.f32 %v643_v7, %v644_v41  ;;  %v648_v62 = vmax.f32 %v646_v30, %v647_v35  ;;  %v1936_v23 = vpop.f32.mrb[27].mxu0  ;;  %v706_v56 = vsel %vm705_vm8, %v704_v37, %v703_v60 }
 0x175   :  { %v2015_v25 = vpop.f32.mrb[26].mxu1  ;;  %v1937_v47 = vadd.f32 %v1936_v23, %v1935_v49 }
 0x176   :  { %v2016_v22 = vpop.f32.mrb[27].mxu1  ;;  %v678_v8 = vadd.f32 %v3356_v43, %v645_v42  ;;  %v649_v13 = vrot.slane %v648_v62, 2 }
 0x177   :  { %v3386_v14 = vadd.f32 %v2016_v22, %v2015_v25  ;;  %v608_v29 = vsel %vm413_vm5, %v1937_v47, -inf  ;;  %v1938_v40 = vpop.f32.mrb[28].mxu0 }
 0x178   :  { %v686_v45 = vmax.f32 %v678_v8, 0.0  ;;  %v650_v46 = vmax.f32 %v648_v62, %v649_v13  ;;  %v653_v20 = vmax.f32 %v1934_v27, %v608_v29  ;;  %v1939_v31 = vpop.f32.mrb[29].mxu0 }
 0x179   :  { %v2018_v48 = vpop.f32.mrb[28].mxu1  ;;  %v1940_v61 = vadd.f32 %v1939_v31, %v1938_v40 }
 0x17a   :  { %v2019_v9 = vpop.f32.mrb[29].mxu1  ;;  %v707_v24 = vrot.slane %v686_v45, 4  ;;  %v651_v38 = vrot.slane %v650_v46, 1  ;;  %v654_v44 = vrot.slane %v653_v20, 4 }
 0x17b   :  { %v3390_v63 = vadd.f32 %v2019_v9, %v2018_v48  ;;  %v1941_v50 = vpop.f32.mrb[30].mxu0 }
 0x17c   :  { %v652_v3 = vmax.f32 %v650_v46, %v651_v38  ;;  %v655_v0 = vmax.f32 %v653_v20, %v654_v44  ;;  %v1942_v33 = vpop.f32.mrb[31].mxu0  ;;  %v709_v5 = vsel %vm708_vm9, %v707_v24, %v706_v56 }
 0x17d   :  { %v2021_v60 = vpop.f32.mrb[30].mxu1  ;;  %v1943_v18 = vadd.f32 %v1942_v33, %v1941_v50 }
 0x17e   :  { %v2022_v26 = vpop.f32.mrb[31].mxu1  ;;  %v679_v28 = vadd.f32 %v3356_v43, %v652_v3  ;;  %v656_v53 = vrot.slane %v655_v0, 2 }
 0x17f   :  { %v3394_v21 = vadd.f32 %v2022_v26, %v2021_v60  ;;  %v610_v57 = vsel %vm413_vm5, %v1943_v18, -inf  ;;  %v2056_v36 = vpop.f32.mrb[32].mxu0 }
 0x180   :  { %v687_v15 = vmax.f32 %v679_v28, 0.0  ;;  %v657_v54 = vmax.f32 %v655_v0, %v656_v53  ;;  %v660_v12 = vmax.f32 %v1940_v61, %v610_v57  ;;  %v2057_v7 = vpop.f32.mrb[33].mxu0 }
 0x181   :  { %v2136_v30 = vpop.f32.mrb[32].mxu1  ;;  %v2058_v6 = vadd.f32 %v2057_v7, %v2056_v36 }
 0x182   :  { %v2137_v17 = vpop.f32.mrb[33].mxu1  ;;  %v710_v27 = vrot.slane %v687_v15, 3  ;;  %v658_v55 = vrot.slane %v657_v54, 1  ;;  %v661_v37 = vrot.slane %v660_v12, 4 }
 0x183   :  { %v3398_v41 = vadd.f32 %v2137_v17, %v2136_v30  ;;  %v997_v35 = vadd.f32 %v2058_v6, %v3334_v1  ;;  %v2059_v49 = vpop.f32.mrb[34].mxu0 }
 0x184   :  { %v659_v42 = vmax.f32 %v657_v54, %v658_v55  ;;  %v662_v62 = vmax.f32 %v660_v12, %v661_v37  ;;  %v2060_v23 = vpop.f32.mrb[35].mxu0  ;;  %v712_v56 = vsel %vm711_vm10, %v710_v27, %v709_v5 }
 0x185   :  { %v2139_v25 = vpop.f32.mrb[34].mxu1  ;;  %v2061_v47 = vadd.f32 %v2060_v23, %v2059_v49 }
 0x186   :  { %v2140_v22 = vpop.f32.mrb[35].mxu1  ;;  %v680_v8 = vadd.f32 %v3356_v43, %v659_v42  ;;  %v663_v13 = vrot.slane %v662_v62, 2 }
 0x187   :  { %v3403_v29 = vadd.f32 %v2140_v22, %v2139_v25  ;;  %v1002_v40 = vadd.f32 %v2061_v47, %v3337_v52  ;;  %v2062_v45 = vpop.f32.mrb[36].mxu0 }
 0x188   :  { %v688_v46 = vmax.f32 %v680_v8, 0.0  ;;  %v664_v20 = vmax.f32 %v662_v62, %v663_v13  ;;  %v2063_v1 = vpop.f32.mrb[37].mxu0 }
 0x189   :  { %v2142_v31 = vpop.f32.mrb[36].mxu1  ;;  %v1076_v48 = vsel %vm413_vm5, %v1002_v40, -inf  ;;  %v2064_v61 = vadd.f32 %v2063_v1, %v2062_v45 }
 0x18a   :  { %v2143_v9 = vpop.f32.mrb[37].mxu1  ;;  %v713_v24 = vrot.slane %v688_v46, 2  ;;  %v665_v38 = vrot.slane %v664_v20, 1  ;;  %v1091_v44 = vmax.f32 %v997_v35, %v1076_v48 }
 0x18b   :  { %v3408_v50 = vadd.f32 %v2143_v9, %v2142_v31  ;;  %v1007_v3 = vadd.f32 %v2064_v61, %v3341_v4  ;;  %v2065_v0 = vpop.f32.mrb[38].mxu0 }
 0x18c   :  { %v666_v52 = vmax.f32 %v664_v20, %v665_v38  ;;  %v1092_v33 = vrot.slane %v1091_v44, 4  ;;  %v2066_v60 = vpop.f32.mrb[39].mxu0  ;;  %v715_v18 = vsel %vm714_vm11, %v713_v24, %v712_v56 }
 0x18d   :  { %v2145_v5 = vpop.f32.mrb[38].mxu1  ;;  %v2067_v26 = vadd.f32 %v2066_v60, %v2065_v0  ;;  %v3433_v60 = vld [vmem:[%s3555_s4 + $0x1] ss:$0 sm:$0xff] }
 0x18e   :  { %v2146_v28 = vpop.f32.mrb[39].mxu1  ;;  %v681_v53 = vadd.f32 %v3356_v43, %v666_v52  ;;  %v1093_v57 = vmax.f32 %v1091_v44, %v1092_v33 }
 0x18f   :  { %v3413_v36 = vadd.f32 %v2146_v28, %v2145_v5  ;;  %v1012_v15 = vadd.f32 %v2067_v26, %v3343_v51  ;;  %v2068_v54 = vpop.f32.mrb[40].mxu0 }
 0x190   :  { %v1094_v12 = vrot.slane %v1093_v57, 2  ;;  %v2069_v7 = vpop.f32.mrb[41].mxu0  ;;  %v689_v30 = vmax.f32 %v681_v53, 0.0 }
 0x191   :  { %v2148_v4 = vpop.f32.mrb[40].mxu1  ;;  %v1078_v6 = vsel %vm413_vm5, %v1012_v15, -inf  ;;  %v2070_v17 = vadd.f32 %v2069_v7, %v2068_v54 }
 0x192   :  { %v2149_v27 = vpop.f32.mrb[41].mxu1  ;;  %v1098_v55 = vmax.f32 %v1007_v3, %v1078_v6  ;;  %v716_v43 = vrot.slane %v689_v30, 1  ;;  %v1095_v42 = vmax.f32 %v1093_v57, %v1094_v12 }
 0x193   :  { %v3418_v37 = vadd.f32 %v2149_v27, %v2148_v4  ;;  %v1017_v35 = vadd.f32 %v2070_v17, %v3347_v19  ;;  %v2071_v49 = vpop.f32.mrb[42].mxu0 }
 0x194   :  { %v1099_v51 = vrot.slane %v1098_v55, 4  ;;  %v2072_v62 = vpop.f32.mrb[43].mxu0  ;;  %v718_v25 = vsel %vm717_vm12, %v716_v43, %v715_v18  ;;  %v1096_v45 = vrot.slane %v1095_v42, 1 }
 0x195   :  { %v2151_v23 = vpop.f32.mrb[42].mxu1  ;;  %v2073_v56 = vadd.f32 %v2072_v62, %v2071_v49  ;;  %720 = vst [vmem:[#allocation10] sm:$0xff] %v718_v25 }
 0x196   :  { %v2152_v47 = vpop.f32.mrb[43].mxu1  ;;  %v1100_v22 = vmax.f32 %v1098_v55, %v1099_v51  ;;  %v1097_v3 = vmax.f32 %v1095_v42, %v1096_v45 }
 0x197   :  { %v3422_v8 = vadd.f32 %v2152_v47, %v2151_v23  ;;  %v1022_v13 = vadd.f32 %v2073_v56, %v3349_v58  ;;  %v2074_v40 = vpop.f32.mrb[44].mxu0 }
 0x198   :  { %v1101_v46 = vrot.slane %v1100_v22, 2  ;;  %v2075_v20 = vpop.f32.mrb[45].mxu0  ;;  %v1154_v15 = vadd.f32 %v3433_v60, %v1097_v3 }
 0x199   :  { %v2154_v19 = vpop.f32.mrb[44].mxu1  ;;  %v1080_v1 = vsel %vm413_vm5, %v1022_v13, -inf  ;;  %v2076_v31 = vadd.f32 %v2075_v20, %v2074_v40 }
 0x19a   :  { %v2155_v48 = vpop.f32.mrb[45].mxu1  ;;  %v1102_v61 = vmax.f32 %v1100_v22, %v1101_v46  ;;  %v1105_v9 = vmax.f32 %v1017_v35, %v1080_v1  ;;  %v1162_v42 = vmax.f32 %v1154_v15, 0.0 }
 0x19b   :  { %v3427_v24 = vadd.f32 %v2155_v48, %v2154_v19  ;;  %v1027_v38 = vadd.f32 %v2076_v31, %v3358_v11  ;;  %v2077_v44 = vpop.f32.mrb[46].mxu0 }
 0x19c   :  { %v1103_v0 = vrot.slane %v1102_v61, 1  ;;  %v1106_v58 = vrot.slane %v1105_v9, 4  ;;  %v2078_v52 = vpop.f32.mrb[47].mxu0 }
 0x19d   :  { %v2157_v33 = vpop.f32.mrb[46].mxu1  ;;  %v2079_v5 = vadd.f32 %v2078_v52, %v2077_v44 }
 0x19e   :  { %v2158_v18 = vpop.f32.mrb[47].mxu1  ;;  %v1104_v26 = vmax.f32 %v1102_v61, %v1103_v0  ;;  %v1107_v28 = vmax.f32 %v1105_v9, %v1106_v58 }
 0x19f   :  { %v3435_v53 = vadd.f32 %v2158_v18, %v2157_v33  ;;  %v1032_v57 = vadd.f32 %v2079_v5, %v3362_v59  ;;  %v2080_v11 = vpop.f32.mrb[48].mxu0 }
 0x1a0   :  { %v1155_v54 = vadd.f32 %v3433_v60, %v1104_v26  ;;  %v1108_v12 = vrot.slane %v1107_v28, 2  ;;  %v2081_v7 = vpop.f32.mrb[49].mxu0 }
 0x1a1   :  { %v2160_v4 = vpop.f32.mrb[48].mxu1  ;;  %v1082_v30 = vsel %vm413_vm5, %v1032_v57, -inf  ;;  %v2082_v6 = vadd.f32 %v2081_v7, %v2080_v11 }
 0x1a2   :  { %v2161_v17 = vpop.f32.mrb[49].mxu1  ;;  %v1163_v27 = vmax.f32 %v1155_v54, 0.0  ;;  %v1109_v55 = vmax.f32 %v1107_v28, %v1108_v12  ;;  %v1112_v43 = vmax.f32 %v1027_v38, %v1082_v30 }
 0x1a3   :  { %v3442_v35 = vadd.f32 %v2161_v17, %v2160_v4  ;;  %v1037_v59 = vadd.f32 %v2082_v6, %v3366_v16  ;;  %v2083_v49 = vpop.f32.mrb[50].mxu0 }
 0x1a4   :  { %v1178_v51 = vrot.slane %v1163_v27, 7  ;;  %v1110_v62 = vrot.slane %v1109_v55, 1  ;;  %v1113_v23 = vrot.slane %v1112_v43, 4  ;;  %v2084_v25 = vpop.f32.mrb[51].mxu0 }
 0x1a5   :  { %v2163_v56 = vpop.f32.mrb[50].mxu1  ;;  %v2085_v47 = vadd.f32 %v2084_v25, %v2083_v49 }
 0x1a6   :  { %v2164_v22 = vpop.f32.mrb[51].mxu1  ;;  %v1179_v13 = vsel %vm699_vm6, %v1178_v51, %v1162_v42  ;;  %v1111_v40 = vmax.f32 %v1109_v55, %v1110_v62  ;;  %v1114_v45 = vmax.f32 %v1112_v43, %v1113_v23 }
 0x1a7   :  { %v3446_v46 = vadd.f32 %v2164_v22, %v2163_v56  ;;  %v1042_v20 = vadd.f32 %v2085_v47, %v3370_v10  ;;  %v2086_v19 = vpop.f32.mrb[52].mxu0 }
 0x1a8   :  { %v1156_v16 = vadd.f32 %v3433_v60, %v1111_v40  ;;  %v1115_v1 = vrot.slane %v1114_v45, 2  ;;  %v2087_v31 = vpop.f32.mrb[53].mxu0 }
 0x1a9   :  { %v2166_v48 = vpop.f32.mrb[52].mxu1  ;;  %v1084_v61 = vsel %vm413_vm5, %v1042_v20, -inf  ;;  %v2088_v9 = vadd.f32 %v2087_v31, %v2086_v19 }
 0x1aa   :  { %v2167_v38 = vpop.f32.mrb[53].mxu1  ;;  %v1164_v44 = vmax.f32 %v1156_v16, 0.0  ;;  %v1116_v3 = vmax.f32 %v1114_v45, %v1115_v1  ;;  %v1119_v0 = vmax.f32 %v1037_v59, %v1084_v61 }
 0x1ab   :  { %v3452_v58 = vadd.f32 %v2167_v38, %v2166_v48  ;;  %v1047_v52 = vadd.f32 %v2088_v9, %v3374_v34  ;;  %v2089_v33 = vpop.f32.mrb[54].mxu0 }
 0x1ac   :  { %v1180_v10 = vrot.slane %v1164_v44, 6  ;;  %v1117_v5 = vrot.slane %v1116_v3, 1  ;;  %v1120_v18 = vrot.slane %v1119_v0, 4  ;;  %v2090_v26 = vpop.f32.mrb[55].mxu0 }
 0x1ad   :  { %v2169_v28 = vpop.f32.mrb[54].mxu1  ;;  %v2091_v57 = vadd.f32 %v2090_v26, %v2089_v33 }
 0x1ae   :  { %v2170_v11 = vpop.f32.mrb[55].mxu1  ;;  %v1118_v15 = vmax.f32 %v1116_v3, %v1117_v5  ;;  %v1121_v54 = vmax.f32 %v1119_v0, %v1120_v18  ;;  %v1181_v7 = vsel %vm702_vm7, %v1180_v10, %v1179_v13 }
 0x1af   :  { %v3455_v12 = vadd.f32 %v2170_v11, %v2169_v28  ;;  %v1052_v4 = vadd.f32 %v2091_v57, %v3378_v2  ;;  %v2092_v30 = vpop.f32.mrb[56].mxu0 }
 0x1b0   :  { %v1157_v6 = vadd.f32 %v3433_v60, %v1118_v15  ;;  %v1122_v34 = vrot.slane %v1121_v54, 2  ;;  %v2093_v17 = vpop.f32.mrb[57].mxu0 }
 0x1b1   :  { %v2172_v27 = vpop.f32.mrb[56].mxu1  ;;  %v1086_v55 = vsel %vm413_vm5, %v1052_v4, -inf  ;;  %v2094_v43 = vadd.f32 %v2093_v17, %v2092_v30 }
 0x1b2   :  { %v2173_v59 = vpop.f32.mrb[57].mxu1  ;;  %v1165_v49 = vmax.f32 %v1157_v6, 0.0  ;;  %v1123_v42 = vmax.f32 %v1121_v54, %v1122_v34  ;;  %v1126_v51 = vmax.f32 %v1047_v52, %v1086_v55 }
 0x1b3   :  { %v3462_v62 = vadd.f32 %v2173_v59, %v2172_v27  ;;  %v1057_v23 = vadd.f32 %v2094_v43, %v3382_v32  ;;  %v2095_v25 = vpop.f32.mrb[58].mxu0 }
 0x1b4   :  { %v1182_v2 = vrot.slane %v1165_v49, 5  ;;  %v1124_v56 = vrot.slane %v1123_v42, 1  ;;  %v1127_v47 = vrot.slane %v1126_v51, 4  ;;  %v2096_v22 = vpop.f32.mrb[59].mxu0 }
 0x1b5   :  { %v2175_v13 = vpop.f32.mrb[58].mxu1  ;;  %v2097_v40 = vadd.f32 %v2096_v22, %v2095_v25 }
 0x1b6   :  { %v2176_v45 = vpop.f32.mrb[59].mxu1  ;;  %v1125_v20 = vmax.f32 %v1123_v42, %v1124_v56  ;;  %v1128_v19 = vmax.f32 %v1126_v51, %v1127_v47  ;;  %v1183_v1 = vsel %vm705_vm8, %v1182_v2, %v1181_v7 }
 0x1b7   :  { %v3465_v16 = vadd.f32 %v2176_v45, %v2175_v13  ;;  %v1062_v31 = vadd.f32 %v2097_v40, %v3386_v14  ;;  %v2098_v48 = vpop.f32.mrb[60].mxu0 }
 0x1b8   :  { %v1158_v61 = vadd.f32 %v3433_v60, %v1125_v20  ;;  %v1129_v32 = vrot.slane %v1128_v19, 2  ;;  %v2099_v9 = vpop.f32.mrb[61].mxu0 }
 0x1b9   :  { %v2178_v38 = vpop.f32.mrb[60].mxu1  ;;  %v1088_v44 = vsel %vm413_vm5, %v1062_v31, -inf  ;;  %v2100_v3 = vadd.f32 %v2099_v9, %v2098_v48 }
 0x1ba   :  { %v2179_v0 = vpop.f32.mrb[61].mxu1  ;;  %v1166_v52 = vmax.f32 %v1158_v61, 0.0  ;;  %v1130_v33 = vmax.f32 %v1128_v19, %v1129_v32  ;;  %v1133_v10 = vmax.f32 %v1057_v23, %v1088_v44 }
 0x1bb   :  { %v3472_v5 = vadd.f32 %v2179_v0, %v2178_v38  ;;  %v1067_v18 = vadd.f32 %v2100_v3, %v3390_v63  ;;  %v2101_v26 = vpop.f32.mrb[62].mxu0 }
 0x1bc   :  { %v1184_v14 = vrot.slane %v1166_v52, 4  ;;  %v1131_v28 = vrot.slane %v1130_v33, 1  ;;  %v1134_v57 = vrot.slane %v1133_v10, 4  ;;  %v2102_v11 = vpop.f32.mrb[63].mxu0 }
 0x1bd   :  { %v2181_v15 = vpop.f32.mrb[62].mxu1  ;;  %v2103_v54 = vadd.f32 %v2102_v11, %v2101_v26 }
 0x1be   :  { %v2182_v7 = vpop.f32.mrb[63].mxu1  ;;  %v1132_v4 = vmax.f32 %v1130_v33, %v1131_v28  ;;  %v1135_v30 = vmax.f32 %v1133_v10, %v1134_v57  ;;  %v1185_v34 = vsel %vm708_vm9, %v1184_v14, %v1183_v1 }
 0x1bf   :  { %v3475_v6 = vadd.f32 %v2182_v7, %v2181_v15  ;;  %v1072_v17 = vadd.f32 %v2103_v54, %v3394_v21  ;;  %v2216_v27 = vpop.f32.mrb[64].mxu0 }
 0x1c0   :  { %v1159_v55 = vadd.f32 %v3433_v60, %v1132_v4  ;;  %v1136_v63 = vrot.slane %v1135_v30, 2  ;;  %v2217_v43 = vpop.f32.mrb[65].mxu0 }
 0x1c1   :  { %v2296_v59 = vpop.f32.mrb[64].mxu1  ;;  %v1090_v49 = vsel %vm413_vm5, %v1072_v17, -inf  ;;  %v2218_v42 = vadd.f32 %v2217_v43, %v2216_v27 }
 0x1c2   :  { %v2297_v51 = vpop.f32.mrb[65].mxu1  ;;  %v1167_v23 = vmax.f32 %v1159_v55, 0.0  ;;  %v1137_v25 = vmax.f32 %v1135_v30, %v1136_v63  ;;  %v1140_v2 = vmax.f32 %v1067_v18, %v1090_v49 }
 0x1c3   :  { %v2298_v56 = vadd.f32 %v2297_v51, %v2296_v59  ;;  %v1502_v47 = vadd.f32 %v2218_v42, %v3398_v41  ;;  %v2219_v22 = vpop.f32.mrb[66].mxu0 }
 0x1c4   :  { %v1186_v13 = vrot.slane %v1167_v23, 3  ;;  %v1138_v21 = vrot.slane %v1137_v25, 1  ;;  %v1141_v40 = vrot.slane %v1140_v2, 4  ;;  %v2220_v45 = vpop.f32.mrb[67].mxu0 }
 0x1c5   :  { %v2299_v20 = vpop.f32.mrb[66].mxu1  ;;  %v1647_v19 = vadd.f32 %v2298_v56, %v1502_v47  ;;  %v2221_v1 = vadd.f32 %v2220_v45, %v2219_v22 }
 0x1c6   :  { %v2300_v31 = vpop.f32.mrb[67].mxu1  ;;  %v1139_v48 = vmax.f32 %v1137_v25, %v1138_v21  ;;  %v1142_v61 = vmax.f32 %v1140_v2, %v1141_v40  ;;  %v1187_v9 = vsel %vm711_vm10, %v1186_v13, %v1185_v34 }
 0x1c7   :  { %v2301_v32 = vadd.f32 %v2300_v31, %v2299_v20  ;;  %v1507_v38 = vadd.f32 %v2221_v1, %v3403_v29  ;;  %v2222_v44 = vpop.f32.mrb[68].mxu0 }
 0x1c8   :  { %v1160_v3 = vadd.f32 %v3433_v60, %v1139_v48  ;;  %v1143_v41 = vrot.slane %v1142_v61, 2  ;;  %v2223_v0 = vpop.f32.mrb[69].mxu0 }
 0x1c9   :  { %v2302_v52 = vpop.f32.mrb[68].mxu1  ;;  %v1652_v33 = vadd.f32 %v2301_v32, %v1507_v38  ;;  %v2224_v10 = vadd.f32 %v2223_v0, %v2222_v44 }
 0x1ca   :  { %v2303_v18 = vpop.f32.mrb[69].mxu1  ;;  %v1144_v26 = vmax.f32 %v1142_v61, %v1143_v41  ;;  %v1168_v28 = vmax.f32 %v1160_v3, 0.0 }
 0x1cb   :  { %v2304_v14 = vadd.f32 %v2303_v18, %v2302_v52  ;;  %v1726_v57 = vsel %vm413_vm5, %v1652_v33, -inf  ;;  %v1512_v11 = vadd.f32 %v2224_v10, %v3408_v50  ;;  %v2225_v15 = vpop.f32.mrb[70].mxu0 }
 0x1cc   :  { %v1145_v54 = vrot.slane %v1144_v26, 1  ;;  %v1741_v29 = vmax.f32 %v1647_v19, %v1726_v57  ;;  %v2226_v7 = vpop.f32.mrb[71].mxu0  ;;  %v1188_v30 = vrot.slane %v1168_v28, 2 }
 0x1cd   :  { %v2305_v4 = vpop.f32.mrb[70].mxu1  ;;  %v1657_v34 = vadd.f32 %v2304_v14, %v1512_v11  ;;  %v2227_v17 = vadd.f32 %v2226_v7, %v2225_v15 }
 0x1ce   :  { %v2306_v27 = vpop.f32.mrb[71].mxu1  ;;  %v1146_v55 = vmax.f32 %v1144_v26, %v1145_v54  ;;  %v1742_v63 = vrot.slane %v1741_v29, 4  ;;  %v1189_v59 = vsel %vm714_vm11, %v1188_v30, %v1187_v9 }
 0x1cf   :  { %v2307_v43 = vadd.f32 %v2306_v27, %v2305_v4  ;;  %v1517_v49 = vadd.f32 %v2227_v17, %v3413_v36  ;;  %v2228_v42 = vpop.f32.mrb[72].mxu0  ;;  %v3503_v27 = vld [vmem:[%s3555_s4 + $0x2] ss:$0 sm:$0xff]  ;;  %s2675_s4 = smov [#allocation10]  }
 0x1d0   :  { %v1743_v51 = vmax.f32 %v1741_v29, %v1742_v63  ;;  %v2229_v23 = vpop.f32.mrb[73].mxu0  ;;  %v1161_v25 = vadd.f32 %v3433_v60, %v1146_v55  ;;  %s1850_s19 = sshll.u32 %s2675_s4, 4  ;;  %s1851_s19 = int_to_ptr.vmem [resolvable:$true] %s1850_s19 }
 0x1d1   :  { %v2308_v50 = vpop.f32.mrb[72].mxu1  ;;  %v1662_v2 = vadd.f32 %v2307_v43, %v1517_v49  ;;  %v2230_v56 = vadd.f32 %v2229_v23, %v2228_v42  ;;  %s2639_s20 = scalar_lea.vmem %s1851_s19, 384  ;;  %p2644_p5 = scmp.lt.s32.totalorder %s1851_s19, %s1851_s19 }
 0x1d2   :  { %v2309_v47 = vpop.f32.mrb[73].mxu1  ;;  %v1744_v22 = vrot.slane %v1743_v51, 2  ;;  %v1169_v21 = vmax.f32 %v1161_v25, 0.0  ;;  %p2640_p4 = scmp.ne.s32.totalorder %s1851_s19, %s2639_s20  ;;  %p2645_p6 = scmp.lt.s32.totalorder %s2639_s20, %s2639_s20 }
 0x1d3   :  { %v2310_v13 = vadd.f32 %v2309_v47, %v2308_v50  ;;  %v1728_v40 = vsel %vm413_vm5, %v1662_v2, -inf  ;;  %v1522_v45 = vadd.f32 %v2230_v56, %v3418_v37  ;;  %v2231_v20 = vpop.f32.mrb[74].mxu0 }
 0x1d4   :  { %v1748_v19 = vmax.f32 %v1657_v34, %v1728_v40  ;;  %v2232_v36 = vpop.f32.mrb[75].mxu0  ;;  %v1190_v31 = vrot.slane %v1169_v21, 1  ;;  %v1745_v48 = vmax.f32 %v1743_v51, %v1744_v22  ;;  %p2646_p7 = por %p2645_p6, %p2644_p5 }
 0x1d5   :  { %v2311_v1 = vpop.f32.mrb[74].mxu1  ;;  %v1667_v61 = vadd.f32 %v2310_v13, %v1522_v45  ;;  %v2233_v32 = vadd.f32 %v2232_v36, %v2231_v20 }
 0x1d6   :  { %v2312_v60 = vpop.f32.mrb[75].mxu1  ;;  %v1749_v9 = vrot.slane %v1748_v19, 4  ;;  %v1191_v44 = vsel %vm717_vm12, %v1190_v31, %v1189_v59  ;;  %v1746_v33 = vrot.slane %v1745_v48, 1  ;;  %p2647_p8 = pnand %p2646_p7, %p2640_p4 }
 0x1d7   :  { %v2313_v38 = vadd.f32 %v2312_v60, %v2311_v1  ;;  %v1527_v3 = vadd.f32 %v2233_v32, %v3422_v8  ;;  %v2234_v41 = vpop.f32.mrb[76].mxu0  ;;  %1193 = vst [vmem:[#allocation10 + $0x8] sm:$0xff] %v1191_v44 }
 0x1d8   :  { %v1750_v0 = vmax.f32 %v1748_v19, %v1749_v9  ;;  %v2235_v52 = vpop.f32.mrb[77].mxu0  ;;  %v1747_v4 = vmax.f32 %v1745_v48, %v1746_v33 }
 0x1d9   :  { %v2314_v37 = vpop.f32.mrb[76].mxu1  ;;  %v1672_v10 = vadd.f32 %v2313_v38, %v1527_v3  ;;  %v2236_v18 = vadd.f32 %v2235_v52, %v2234_v41 }
 0x1da   :  { %v2315_v26 = vpop.f32.mrb[77].mxu1  ;;  %v1751_v14 = vrot.slane %v1750_v0, 2  ;;  %v1804_v50 = vadd.f32 %v3503_v27, %v1747_v4 }
 0x1db   :  { %v2316_v28 = vadd.f32 %v2315_v26, %v2314_v37  ;;  %v1730_v57 = vsel %vm413_vm5, %v1672_v10, -inf  ;;  %v1532_v11 = vadd.f32 %v2236_v18, %v3427_v24  ;;  %v2237_v15 = vpop.f32.mrb[78].mxu0 }
 0x1dc   :  { %v1752_v54 = vmax.f32 %v1750_v0, %v1751_v14  ;;  %v1755_v29 = vmax.f32 %v1667_v61, %v1730_v57  ;;  %v2238_v8 = vpop.f32.mrb[79].mxu0  ;;  %v1812_v31 = vmax.f32 %v1804_v50, 0.0 }
 0x1dd   :  { %v2317_v7 = vpop.f32.mrb[78].mxu1  ;;  %v1677_v30 = vadd.f32 %v2316_v28, %v1532_v11  ;;  %v2239_v34 = vadd.f32 %v2238_v8, %v2237_v15 }
 0x1de   :  { %v2318_v17 = vpop.f32.mrb[79].mxu1  ;;  %v1753_v55 = vrot.slane %v1752_v54, 1  ;;  %v1756_v63 = vrot.slane %v1755_v29, 4 }
 0x1df   :  { %v2319_v43 = vadd.f32 %v2318_v17, %v2317_v7  ;;  %v1537_v59 = vadd.f32 %v2239_v34, %v3435_v53  ;;  %v2240_v24 = vpop.f32.mrb[80].mxu0 }
 0x1e0   :  { %v1754_v49 = vmax.f32 %v1752_v54, %v1753_v55  ;;  %v1757_v42 = vmax.f32 %v1755_v29, %v1756_v63  ;;  %v2241_v51 = vpop.f32.mrb[81].mxu0 }
 0x1e1   :  { %v2320_v23 = vpop.f32.mrb[80].mxu1  ;;  %v1682_v25 = vadd.f32 %v2319_v43, %v1537_v59  ;;  %v2242_v2 = vadd.f32 %v2241_v51, %v2240_v24 }
 0x1e2   :  { %v2321_v56 = vpop.f32.mrb[81].mxu1  ;;  %v1805_v47 = vadd.f32 %v3503_v27, %v1754_v49  ;;  %v1758_v22 = vrot.slane %v1757_v42, 2 }
 0x1e3   :  { %v2322_v13 = vadd.f32 %v2321_v56, %v2320_v23  ;;  %v1732_v21 = vsel %vm413_vm5, %v1682_v25, -inf  ;;  %v1542_v40 = vadd.f32 %v2242_v2, %v3442_v35  ;;  %v2243_v53 = vpop.f32.mrb[82].mxu0 }
 0x1e4   :  { %v1813_v45 = vmax.f32 %v1805_v47, 0.0  ;;  %v1759_v20 = vmax.f32 %v1757_v42, %v1758_v22  ;;  %v1762_v19 = vmax.f32 %v1677_v30, %v1732_v21  ;;  %v2244_v36 = vpop.f32.mrb[83].mxu0 }
 0x1e5   :  { %v2323_v1 = vpop.f32.mrb[82].mxu1  ;;  %v1687_v48 = vadd.f32 %v2322_v13, %v1542_v40  ;;  %v2245_v61 = vadd.f32 %v2244_v36, %v2243_v53 }
 0x1e6   :  { %v2324_v32 = vpop.f32.mrb[83].mxu1  ;;  %v1828_v60 = vrot.slane %v1813_v45, 7  ;;  %v1760_v9 = vrot.slane %v1759_v20, 1  ;;  %v1763_v38 = vrot.slane %v1762_v19, 4 }
 0x1e7   :  { %v2325_v44 = vadd.f32 %v2324_v32, %v2323_v1  ;;  %v1547_v3 = vadd.f32 %v2245_v61, %v3446_v46  ;;  %v2246_v41 = vpop.f32.mrb[84].mxu0 }
 0x1e8   :  { %v1829_v0 = vsel %vm699_vm6, %v1828_v60, %v1812_v31  ;;  %v1761_v35 = vmax.f32 %v1759_v20, %v1760_v9  ;;  %v1764_v52 = vmax.f32 %v1762_v19, %v1763_v38  ;;  %v2247_v37 = vpop.f32.mrb[85].mxu0 }
 0x1e9   :  { %v2326_v33 = vpop.f32.mrb[84].mxu1  ;;  %v1692_v10 = vadd.f32 %v2325_v44, %v1547_v3  ;;  %v2248_v18 = vadd.f32 %v2247_v37, %v2246_v41 }
 0x1ea   :  { %v2327_v26 = vpop.f32.mrb[85].mxu1  ;;  %v1806_v14 = vadd.f32 %v3503_v27, %v1761_v35  ;;  %v1765_v28 = vrot.slane %v1764_v52, 2 }
 0x1eb   :  { %v2328_v57 = vadd.f32 %v2327_v26, %v2326_v33  ;;  %v1734_v11 = vsel %vm413_vm5, %v1692_v10, -inf  ;;  %v1552_v15 = vadd.f32 %v2248_v18, %v3452_v58  ;;  %v2249_v46 = vpop.f32.mrb[86].mxu0 }
 0x1ec   :  { %v1814_v54 = vmax.f32 %v1806_v14, 0.0  ;;  %v1766_v29 = vmax.f32 %v1764_v52, %v1765_v28  ;;  %v1769_v8 = vmax.f32 %v1687_v48, %v1734_v11  ;;  %v2250_v7 = vpop.f32.mrb[87].mxu0 }
 0x1ed   :  { %v2329_v4 = vpop.f32.mrb[86].mxu1  ;;  %v1697_v30 = vadd.f32 %v2328_v57, %v1552_v15  ;;  %v2251_v34 = vadd.f32 %v2250_v7, %v2249_v46 }
 0x1ee   :  { %v2330_v17 = vpop.f32.mrb[87].mxu1  ;;  %v1830_v55 = vrot.slane %v1814_v54, 6  ;;  %v1767_v63 = vrot.slane %v1766_v29, 1  ;;  %v1770_v43 = vrot.slane %v1769_v8, 4 }
 0x1ef   :  { %v2331_v59 = vadd.f32 %v2330_v17, %v2329_v4  ;;  %v1557_v24 = vadd.f32 %v2251_v34, %v3455_v12  ;;  %v2252_v49 = vpop.f32.mrb[88].mxu0 }
 0x1f0   :  { %v1768_v42 = vmax.f32 %v1766_v29, %v1767_v63  ;;  %v1771_v51 = vmax.f32 %v1769_v8, %v1770_v43  ;;  %v2253_v23 = vpop.f32.mrb[89].mxu0  ;;  %v1831_v50 = vsel %vm702_vm7, %v1830_v55, %v1829_v0 }
 0x1f1   :  { %v2332_v58 = vpop.f32.mrb[88].mxu1  ;;  %v1702_v25 = vadd.f32 %v2331_v59, %v1557_v24  ;;  %v2254_v2 = vadd.f32 %v2253_v23, %v2252_v49 }
 0x1f2   :  { %v2333_v56 = vpop.f32.mrb[89].mxu1  ;;  %v1807_v47 = vadd.f32 %v3503_v27, %v1768_v42  ;;  %v1772_v22 = vrot.slane %v1771_v51, 2 }
 0x1f3   :  { %v2334_v13 = vadd.f32 %v2333_v56, %v2332_v58  ;;  %v1736_v21 = vsel %vm413_vm5, %v1702_v25, -inf  ;;  %v1562_v40 = vadd.f32 %v2254_v2, %v3462_v62  ;;  %v2255_v12 = vpop.f32.mrb[90].mxu0 }
 0x1f4   :  { %v1815_v53 = vmax.f32 %v1807_v47, 0.0  ;;  %v1773_v45 = vmax.f32 %v1771_v51, %v1772_v22  ;;  %v1776_v20 = vmax.f32 %v1697_v30, %v1736_v21  ;;  %v2256_v19 = vpop.f32.mrb[91].mxu0 }
 0x1f5   :  { %v2335_v36 = vpop.f32.mrb[90].mxu1  ;;  %v1707_v1 = vadd.f32 %v2334_v13, %v1562_v40  ;;  %v2257_v31 = vadd.f32 %v2256_v19, %v2255_v12 }
 0x1f6   :  { %v2336_v48 = vpop.f32.mrb[91].mxu1  ;;  %v1832_v61 = vrot.slane %v1815_v53, 5  ;;  %v1774_v32 = vrot.slane %v1773_v45, 1  ;;  %v1777_v60 = vrot.slane %v1776_v20, 4 }
 0x1f7   :  { %v2337_v9 = vadd.f32 %v2336_v48, %v2335_v36  ;;  %v1567_v38 = vadd.f32 %v2257_v31, %v3465_v16  ;;  %v2258_v44 = vpop.f32.mrb[92].mxu0 }
 0x1f8   :  { %v1775_v3 = vmax.f32 %v1773_v45, %v1774_v32  ;;  %v1778_v41 = vmax.f32 %v1776_v20, %v1777_v60  ;;  %v2259_v0 = vpop.f32.mrb[93].mxu0  ;;  %v1833_v35 = vsel %vm705_vm8, %v1832_v61, %v1831_v50 }
 0x1f9   :  { %v2338_v62 = vpop.f32.mrb[92].mxu1  ;;  %v1712_v52 = vadd.f32 %v2337_v9, %v1567_v38  ;;  %v2260_v37 = vadd.f32 %v2259_v0, %v2258_v44 }
 0x1fa   :  { %v2339_v33 = vpop.f32.mrb[93].mxu1  ;;  %v1808_v10 = vadd.f32 %v3503_v27, %v1775_v3  ;;  %v1779_v18 = vrot.slane %v1778_v41, 2 }
 0x1fb   :  { %v2340_v26 = vadd.f32 %v2339_v33, %v2338_v62  ;;  %v1738_v14 = vsel %vm413_vm5, %v1712_v52, -inf  ;;  %v1572_v28 = vadd.f32 %v2260_v37, %v3472_v5  ;;  %v2261_v16 = vpop.f32.mrb[94].mxu0 }
 0x1fc   :  { %v1816_v57 = vmax.f32 %v1808_v10, 0.0  ;;  %v1780_v11 = vmax.f32 %v1778_v41, %v1779_v18  ;;  %v1783_v15 = vmax.f32 %v1707_v1, %v1738_v14  ;;  %v2262_v46 = vpop.f32.mrb[95].mxu0 }
 0x1fd   :  { %v2341_v54 = vpop.f32.mrb[94].mxu1  ;;  %v1717_v29 = vadd.f32 %v2340_v26, %v1572_v28  ;;  %v2263_v8 = vadd.f32 %v2262_v46, %v2261_v16 }
 0x1fe   :  { %v2342_v7 = vpop.f32.mrb[95].mxu1  ;;  %v1834_v4 = vrot.slane %v1816_v57, 4  ;;  %v1781_v30 = vrot.slane %v1780_v11, 1  ;;  %v1784_v34 = vrot.slane %v1783_v15, 4 }
 0x1ff   :  { %v2343_v17 = vadd.f32 %v2342_v7, %v2341_v54  ;;  %v1577_v55 = vadd.f32 %v2263_v8, %v3475_v6 }
 0x200   :  { %v1782_v63 = vmax.f32 %v1780_v11, %v1781_v30  ;;  %v1785_v43 = vmax.f32 %v1783_v15, %v1784_v34  ;;  %v1835_v59 = vsel %vm708_vm9, %v1834_v4, %v1833_v35 }
 0x201   :  { %v1722_v5 = vadd.f32 %v2343_v17, %v1577_v55 }
 0x202   :  { %v1809_v24 = vadd.f32 %v3503_v27, %v1782_v63  ;;  %v1786_v49 = vrot.slane %v1785_v43, 2 }
 0x203   :  { %v1740_v42 = vsel %vm413_vm5, %v1722_v5, -inf }
 0x204   :  { %v1817_v51 = vmax.f32 %v1809_v24, 0.0  ;;  %v1787_v23 = vmax.f32 %v1785_v43, %v1786_v49  ;;  %v1790_v58 = vmax.f32 %v1717_v29, %v1740_v42 }
 0x206   :  { %v1836_v50 = vrot.slane %v1817_v51, 3  ;;  %v1788_v25 = vrot.slane %v1787_v23, 1  ;;  %v1791_v2 = vrot.slane %v1790_v58, 4 }
 0x208   :  { %v1789_v56 = vmax.f32 %v1787_v23, %v1788_v25  ;;  %v1792_v47 = vmax.f32 %v1790_v58, %v1791_v2  ;;  %v1837_v6 = vsel %vm711_vm10, %v1836_v50, %v1835_v59 }
 0x20a   :  { %v1810_v22 = vadd.f32 %v3503_v27, %v1789_v56  ;;  %v1793_v13 = vrot.slane %v1792_v47, 2 }
 0x20c   :  { %v1794_v21 = vmax.f32 %v1792_v47, %v1793_v13  ;;  %v1818_v40 = vmax.f32 %v1810_v22, 0.0 }
 0x20e   :  { %v1795_v12 = vrot.slane %v1794_v21, 1  ;;  %v1838_v53 = vrot.slane %v1818_v40, 2 }
 0x210   :  { %v1796_v45 = vmax.f32 %v1794_v21, %v1795_v12  ;;  %v1839_v39 = vsel %vm714_vm11, %v1838_v53, %v1837_v6 }
 0x212   :  { %v1811_v20 = vadd.f32 %v3503_v27, %v1796_v45 }
 0x214   :  { %v1819_v19 = vmax.f32 %v1811_v20, 0.0 }
 0x216   :  { %v1840_v36 = vrot.slane %v1819_v19, 1 }
 0x218   :  { %v1841_v1 = vsel %vm717_vm12, %v1840_v36, %v1839_v39 }
 0x219   :  { %1843 = vst [vmem:[#allocation10 + $0x10] sm:$0xff] %v1841_v1 }
 0x21a   :  { %2650 = shalt.err (!%p2647_p8)
}
 0x21b   :  { %s2651_s24 = scalar_lea.hbm %s3556_s5, 384 }
 0x21c   :  { %p2652_p9 = scmp.ne.s32.totalorder %s3556_s5, %s2651_s24  ;;  %p2655_p10 = scmp.lt.u32.totalorder %s2651_s24, %s3556_s5 }
 0x21e   :  { %p2657_p11 = pnand %p2655_p10, %p2652_p9 }
 0x220   :  { %2660 = shalt.err (!%p2657_p11)
}
 0x221   :  { %1853 = dma.vmem_to_hbm [thread:$0]  %s1851_s19, 384, %s3556_s5, [#allocation4]  }
 0x222   :  { %2667 = dma.done.wait [#allocation4], 384  }
 0x223   :  { %2668 = vsyncadd [#allocation4], 4294966912 }
 0x224   :  { %1857 = vsyncpa [#allocation3], 1 }
 0x225   :  { %1858 = vsyncpa [#allocation6], 1 }
 0x226   :  { %1859 = vsyncpa [#allocation9], 1 }
 0x227   :  { %1860 = vsyncpa [#allocation4], 1 }

</bundles_post_ra>
